<compile_context>
chip_gen: v5e
topology: v5e:2x2
jax: 0.10.0
libtpu: 0.0.40
codegen_flags: <defaults>
</compile_context>

<pallas_src>
import functools

import jax
import jax.numpy as jnp
from jax import lax
from jax.experimental import pallas as pl
from jax.experimental.pallas import tpu as pltpu


# -------------------- config (mirrors the torch config object) --------------------
class Config:
    embed_size = 32
    hidden_size = 32
    hidden_layers = 1          # single layer implemented
    dropout_keep = 0.0         # identity at inference
    bidirectional = True
    output_size = 4


LANE = 128                     # lane-dense padded output width


# ------------------------------------ kernel ---------------------------------------
def textrnn_kernel(xcat_ref, wih_ref, whh_ref, b_ref,
                   gamma_ref, beta_ref, wfc_ref, bfc_ref,
                   out_ref, *, num_classes):
    T, B, twoE = xcat_ref.shape
    twoH = whh_ref.shape[0]
    H = twoH // 2

    # ---- input projection for BOTH directions, hoisted out of the recurrence ----
    # x_cat[t] = [emb[t] | emb[T-1-t]]; W_ih is block-structured so the forward half
    # of the gate lanes only sees emb[t] and the reverse half only sees emb[T-1-t].
    # Bias is folded in here (single add, outside the serial loop).
    x_flat = xcat_ref[...].reshape(T * B, twoE)
    gx = (jnp.dot(x_flat, wih_ref[...], preferred_element_type=jnp.float32)
          + b_ref[...])
    gx = gx.reshape(T, B, 8 * H)   # gate-interleaved: [i_f,i_r,f_f,f_r,g_f,g_r,o_f,o_r]

    whh = whh_ref[...]             # [2H, 8H] block-diagonal fused recurrent weights

    h_cat = jnp.zeros((B, twoH), jnp.float32)   # [h_f | h_r]
    c_cat = jnp.zeros((B, twoH), jnp.float32)   # [c_f | c_r]
    s_cat = jnp.zeros((B, twoH), jnp.float32)   # running sum over time

    # Fully-unrolled serial recurrence (T is a small static trip count): one
    # [B,2H] x [2H,8H] matmul + one full-tile sigmoid + one narrow tanh per step,
    # covering BOTH directions at once.
    for t in range(T):
        gates = gx[t] + jnp.dot(h_cat, whh, preferred_element_type=jnp.float32)
        sig = jax.nn.sigmoid(gates)             # single EUP pass over whole tile
        i_g = sig[:, 0:twoH]                    # [i_f | i_r]
        f_g = sig[:, 2 * H:4 * H]               # [f_f | f_r]
        o_g = sig[:, 6 * H:8 * H]               # [o_f | o_r]
        g_g = jnp.tanh(gates[:, 4 * H:6 * H])   # [g_f | g_r]
        c_cat = f_g * c_cat + i_g * g_g
        h_cat = o_g * jnp.tanh(c_cat)
        s_cat = s_cat + h_cat

    # lstm_out.mean(axis=0): mean over time of concat(h_fwd, h_bwd); the mean is
    # order-invariant so summing the (time-flipped) reverse states is fine.
    mean_out = s_cat * (1.0 / T)                # [B, 2H]

    # LayerNorm over last dim (eps = 1e-5, PyTorch default)
    mu = jnp.mean(mean_out, axis=-1, keepdims=True)
    var = jnp.mean((mean_out - mu) ** 2, axis=-1, keepdims=True)
    normed = (mean_out - mu) * lax.rsqrt(var + 1e-5)
    normed = normed * gamma_ref[...] + beta_ref[...]

    # Final linear into a lane-dense 128-wide tile; mask padded lanes before softmax
    # so the denominator only covers real classes.
    logits = jnp.dot(normed, wfc_ref[...],
                     preferred_element_type=jnp.float32) + bfc_ref[...]
    lane_id = lax.broadcasted_iota(jnp.int32, logits.shape, 1)
    logits = jnp.where(lane_id < num_classes, logits, jnp.float32(-1e30))
    m = jnp.max(logits, axis=-1, keepdims=True)
    e = jnp.exp(logits - m)
    out_ref[...] = e / jnp.sum(e, axis=-1, keepdims=True)


# ------------------------------- weight pre-fusion ----------------------------------
def _gate_block(wf_g, wr_g):
    """[rows_f + rows_r, 2H] block-diagonal: forward gate cols then reverse gate cols."""
    H = wf_g.shape[1]
    rf, rr = wf_g.shape[0], wr_g.shape[0]
    top = jnp.concatenate([wf_g, jnp.zeros((rf, H), wf_g.dtype)], axis=1)
    bot = jnp.concatenate([jnp.zeros((rr, H), wr_g.dtype), wr_g], axis=1)
    return jnp.concatenate([top, bot], axis=0)


def fuse_params(params, cfg):
    """Fuse both LSTM directions into gate-interleaved block weights; pad FC to 128 lanes."""
    H, O = cfg.hidden_size, cfg.output_size
    wif, whf, bf = params["wif"], params["whf"], params["bf"]
    wir, whr, br = params["wir"], params["whr"], params["br"]

    w_ih = jnp.concatenate(
        [_gate_block(wif[:, g * H:(g + 1) * H], wir[:, g * H:(g + 1) * H])
         for g in range(4)], axis=1)                              # [2E, 8H]
    w_hh = jnp.concatenate(
        [_gate_block(whf[:, g * H:(g + 1) * H], whr[:, g * H:(g + 1) * H])
         for g in range(4)], axis=1)                              # [2H, 8H]
    b = jnp.concatenate(
        [jnp.concatenate([bf[:, g * H:(g + 1) * H], br[:, g * H:(g + 1) * H]], axis=1)
         for g in range(4)], axis=1)                              # [1, 8H]

    wfc_pad = jnp.zeros((2 * H, LANE), jnp.float32).at[:, :O].set(params["wfc"])
    bfc_pad = jnp.zeros((1, LANE), jnp.float32).at[:, :O].set(params["bfc"])
    return {"w_ih": w_ih, "w_hh": w_hh, "b": b,
            "gamma": params["gamma"], "beta": params["beta"],
            "wfc_pad": wfc_pad, "bfc_pad": bfc_pad}


# ------------------------------------ wrapper ---------------------------------------
def textrnn_forward(x_ids, params, cfg):
    embedded = jnp.take(params["embeddings"], x_ids, axis=0)      # [T, B, E] (glue gather)
    T, B, E = embedded.shape
    H, O = cfg.hidden_size, cfg.output_size

    fused = fuse_params(params, cfg)
    # x_cat[t] = [emb[t] | emb[T-1-t]] so fwd/rev share one recurrence loop.
    x_cat = jnp.concatenate([embedded, jnp.flip(embedded, axis=0)], axis=-1)  # [T, B, 2E]

    kernel_inputs = (
        x_cat, fused["w_ih"], fused["w_hh"], fused["b"],
        fused["gamma"], fused["beta"], fused["wfc_pad"], fused["bfc_pad"],
    )
    vmem_spec = pl.BlockSpec(memory_space=pltpu.MemorySpace.VMEM)

    flops = (2 * T * B * (2 * E) * (8 * H)        # input projection (both dirs)
             + 2 * T * B * (2 * H) * (8 * H)      # fused recurrence matmuls
             + 2 * B * (2 * H) * LANE)            # final FC
    transcendentals = T * B * (8 * H + 2 * H + 2 * H) + B * LANE
    bytes_accessed = 4 * (T * B * 2 * E            # x_cat
                          + 2 * E * 8 * H          # w_ih
                          + 2 * H * 8 * H          # w_hh
                          + 8 * H                  # bias
                          + 2 * 2 * H              # gamma, beta
                          + 2 * H * LANE + LANE    # fc weight + bias
                          + B * LANE)              # output

    out_padded = pl.pallas_call(
        functools.partial(textrnn_kernel, num_classes=O),
        out_shape=jax.ShapeDtypeStruct((B, LANE), jnp.float32),
        in_specs=[vmem_spec] * len(kernel_inputs),
        out_specs=vmem_spec,
        cost_estimate=pl.CostEstimate(
            flops=flops, transcendentals=transcendentals,
            bytes_accessed=bytes_accessed),
    )(*kernel_inputs)
    return out_padded[:, :O]


# -------------------------------- params & reference --------------------------------
def make_params(cfg, vocab_size, key):
    E, H, O = cfg.embed_size, cfg.hidden_size, cfg.output_size
    keys = jax.random.split(key, 12)
    scale = 0.1

    def rnd(k, shape):
        return (scale * jax.random.normal(k, shape)).astype(jnp.float32)

    return {
        "embeddings": rnd(keys[0], (vocab_size, E)),
        # LSTM weights stored pre-transposed so the kernel computes x @ W
        "wif": rnd(keys[1], (E, 4 * H)),
        "whf": rnd(keys[2], (H, 4 * H)),
        "bf":  rnd(keys[3], (1, 4 * H)),     # b_ih + b_hh folded into one bias
        "wir": rnd(keys[4], (E, 4 * H)),
        "whr": rnd(keys[5], (H, 4 * H)),
        "br":  rnd(keys[6], (1, 4 * H)),
        "gamma": jnp.ones((1, 2 * H), jnp.float32),
        "beta":  jnp.zeros((1, 2 * H), jnp.float32),
        "wfc": rnd(keys[7], (2 * H, O)),
        "bfc": rnd(keys[8], (1, O)),
    }


def reference_forward(x_ids, params, cfg):
    """Pure-JAX reference (unfused, per-direction) for correctness checking."""
    E, H = cfg.embed_size, cfg.hidden_size
    emb = jnp.take(params["embeddings"], x_ids, axis=0)   # [T, B, E]
    T, B, _ = emb.shape

    def cell(x, h, c, wi, wh, b):
        gates = x @ wi + h @ wh + b
        i = jax.nn.sigmoid(gates[:, 0:H])
        f = jax.nn.sigmoid(gates[:, H:2 * H])
        g = jnp.tanh(gates[:, 2 * H:3 * H])
        o = jax.nn.sigmoid(gates[:, 3 * H:4 * H])
        c = f * c + i * g
        return o * jnp.tanh(c), c

    h_f = c_f = h_r = c_r = jnp.zeros((B, H), jnp.float32)
    outs_f, outs_r = [], []
    for t in range(T):
        h_f, c_f = cell(emb[t], h_f, c_f, params["wif"], params["whf"], params["bf"])
        outs_f.append(h_f)
    for t in range(T - 1, -1, -1):
        h_r, c_r = cell(emb[t], h_r, c_r, params["wir"], params["whr"], params["br"])
        outs_r.append(h_r)
    outs_r = outs_r[::-1]
    lstm_out = jnp.concatenate(
        [jnp.stack(outs_f, 0), jnp.stack(outs_r, 0)], axis=-1)   # [T, B, 2H]
    mean_out = lstm_out.mean(axis=0)
    mu = mean_out.mean(-1, keepdims=True)
    var = ((mean_out - mu) ** 2).mean(-1, keepdims=True)
    normed = (mean_out - mu) * lax.rsqrt(var + 1e-5)
    normed = normed * params["gamma"] + params["beta"]
    logits = normed @ params["wfc"] + params["bfc"]
    return jax.nn.softmax(logits, axis=-1)


if __name__ == "__main__":
    cfg = Config()
    vocab_size = 50
    T, B = 8, 2

    key = jax.random.PRNGKey(0)
    k_par, k_x = jax.random.split(key)
    params = make_params(cfg, vocab_size, k_par)
    x_ids = jax.random.randint(k_x, (T, B), 0, vocab_size, dtype=jnp.int32)

    out = textrnn_forward(x_ids, params, cfg)
    out = jax.block_until_ready(out)

    ref = reference_forward(x_ids, params, cfg)
    assert out.shape == (B, cfg.output_size)
    assert bool(jnp.all(jnp.isfinite(out)))
    assert bool(jnp.allclose(out, ref, atol=2e-4, rtol=2e-4))
    # rows sum to 1 (softmax over real classes only; padded lanes masked to ~-inf)
    assert bool(jnp.allclose(out.sum(-1), jnp.ones((B,)), atol=1e-5))

    print("KERNEL_OK")
</pallas_src>

<mosaic_0001>
module attributes {stable_mosaic.version = 11 : i64} {
  func.func @textrnn_kernel(%arg0: memref<8x2x64xf32, #tpu.memory_space<vmem>>, %arg1: memref<64x256xf32, #tpu.memory_space<vmem>>, %arg2: memref<64x256xf32, #tpu.memory_space<vmem>>, %arg3: memref<1x256xf32, #tpu.memory_space<vmem>>, %arg4: memref<1x64xf32, #tpu.memory_space<vmem>>, %arg5: memref<1x64xf32, #tpu.memory_space<vmem>>, %arg6: memref<64x128xf32, #tpu.memory_space<vmem>>, %arg7: memref<1x128xf32, #tpu.memory_space<vmem>>, %arg8: memref<2x128xf32, #tpu.memory_space<vmem>>) attributes {dimension_semantics = [], scalar_prefetch = 0 : i64, scratch_operands = 0 : i64, tpu.core_type = #tpu.core_type<tc>} {
    %c0 = arith.constant 0 : index
    %c0_0 = arith.constant 0 : index
    %c0_1 = arith.constant 0 : index
    %0 = vector.load %arg0[%c0, %c0_0, %c0_1] : memref<8x2x64xf32, #tpu.memory_space<vmem>>, vector<8x2x64xf32>
    %1 = vector.shape_cast %0 : vector<8x2x64xf32> to vector<16x64xf32>
    %c0_2 = arith.constant 0 : index
    %c0_3 = arith.constant 0 : index
    %2 = vector.load %arg1[%c0_2, %c0_3] : memref<64x256xf32, #tpu.memory_space<vmem>>, vector<64x256xf32>
    %cst = arith.constant dense<0.000000e+00> : vector<16x256xf32>
    %3 = tpu.matmul %1, %2, %cst {dimension_numbers = #tpu.dot_dimension_numbers<[1], [0], [0], [1], [0, 0, 1, 1], [], []>} : vector<16x64xf32>, vector<64x256xf32>, vector<16x256xf32> -> vector<16x256xf32>
    %c0_4 = arith.constant 0 : index
    %c0_5 = arith.constant 0 : index
    %4 = vector.load %arg3[%c0_4, %c0_5] : memref<1x256xf32, #tpu.memory_space<vmem>>, vector<1x256xf32>
    %5 = vector.broadcast %4 : vector<1x256xf32> to vector<16x256xf32>
    %6 = arith.addf %3, %5 : vector<16x256xf32>
    %7 = vector.shape_cast %6 : vector<16x256xf32> to vector<8x2x256xf32>
    %c0_6 = arith.constant 0 : index
    %c0_7 = arith.constant 0 : index
    %8 = vector.load %arg2[%c0_6, %c0_7] : memref<64x256xf32, #tpu.memory_space<vmem>>, vector<64x256xf32>
    %cst_8 = arith.constant 0.000000e+00 : f32
    %9 = vector.broadcast %cst_8 : f32 to vector<2x64xf32>
    %cst_9 = arith.constant 0.000000e+00 : f32
    %10 = vector.broadcast %cst_9 : f32 to vector<2x64xf32>
    %cst_10 = arith.constant 0.000000e+00 : f32
    %11 = vector.broadcast %cst_10 : f32 to vector<2x64xf32>
    %12 = vector.extract_strided_slice %7 {offsets = [0, 0, 0], sizes = [1, 2, 256], strides = [1, 1, 1]} : vector<8x2x256xf32> to vector<1x2x256xf32>
    %13 = vector.shape_cast %12 : vector<1x2x256xf32> to vector<2x256xf32>
    %cst_11 = arith.constant dense<0.000000e+00> : vector<2x256xf32>
    %14 = tpu.matmul %9, %8, %cst_11 {dimension_numbers = #tpu.dot_dimension_numbers<[1], [0], [0], [1], [0, 0, 1, 1], [], []>} : vector<2x64xf32>, vector<64x256xf32>, vector<2x256xf32> -> vector<2x256xf32>
    %15 = arith.addf %13, %14 : vector<2x256xf32>
    %16 = arith.negf %15 : vector<2x256xf32>
    %17 = math.exp %16 : vector<2x256xf32>
    %cst_12 = arith.constant 1.000000e+00 : f32
    %18 = vector.broadcast %cst_12 : f32 to vector<2x256xf32>
    %19 = arith.addf %18, %17 : vector<2x256xf32>
    %20 = arith.divf %18, %19 : vector<2x256xf32>
    %21 = vector.extract_strided_slice %20 {offsets = [0, 0], sizes = [2, 64], strides = [1, 1]} : vector<2x256xf32> to vector<2x64xf32>
    %22 = vector.extract_strided_slice %20 {offsets = [0, 64], sizes = [2, 64], strides = [1, 1]} : vector<2x256xf32> to vector<2x64xf32>
    %23 = vector.extract_strided_slice %20 {offsets = [0, 192], sizes = [2, 64], strides = [1, 1]} : vector<2x256xf32> to vector<2x64xf32>
    %24 = vector.extract_strided_slice %15 {offsets = [0, 128], sizes = [2, 64], strides = [1, 1]} : vector<2x256xf32> to vector<2x64xf32>
    %25 = math.tanh %24 : vector<2x64xf32>
    %26 = arith.mulf %22, %10 : vector<2x64xf32>
    %27 = arith.mulf %21, %25 : vector<2x64xf32>
    %28 = arith.addf %26, %27 : vector<2x64xf32>
    %29 = math.tanh %28 : vector<2x64xf32>
    %30 = arith.mulf %23, %29 : vector<2x64xf32>
    %31 = arith.addf %11, %30 : vector<2x64xf32>
    %32 = vector.extract_strided_slice %7 {offsets = [1, 0, 0], sizes = [1, 2, 256], strides = [1, 1, 1]} : vector<8x2x256xf32> to vector<1x2x256xf32>
    %33 = vector.shape_cast %32 : vector<1x2x256xf32> to vector<2x256xf32>
    %cst_13 = arith.constant dense<0.000000e+00> : vector<2x256xf32>
    %34 = tpu.matmul %30, %8, %cst_13 {dimension_numbers = #tpu.dot_dimension_numbers<[1], [0], [0], [1], [0, 0, 1, 1], [], []>} : vector<2x64xf32>, vector<64x256xf32>, vector<2x256xf32> -> vector<2x256xf32>
    %35 = arith.addf %33, %34 : vector<2x256xf32>
    %36 = arith.negf %35 : vector<2x256xf32>
    %37 = math.exp %36 : vector<2x256xf32>
    %cst_14 = arith.constant 1.000000e+00 : f32
    %38 = vector.broadcast %cst_14 : f32 to vector<2x256xf32>
    %39 = arith.addf %38, %37 : vector<2x256xf32>
    %40 = arith.divf %38, %39 : vector<2x256xf32>
    %41 = vector.extract_strided_slice %40 {offsets = [0, 0], sizes = [2, 64], strides = [1, 1]} : vector<2x256xf32> to vector<2x64xf32>
    %42 = vector.extract_strided_slice %40 {offsets = [0, 64], sizes = [2, 64], strides = [1, 1]} : vector<2x256xf32> to vector<2x64xf32>
    %43 = vector.extract_strided_slice %40 {offsets = [0, 192], sizes = [2, 64], strides = [1, 1]} : vector<2x256xf32> to vector<2x64xf32>
    %44 = vector.extract_strided_slice %35 {offsets = [0, 128], sizes = [2, 64], strides = [1, 1]} : vector<2x256xf32> to vector<2x64xf32>
    %45 = math.tanh %44 : vector<2x64xf32>
    %46 = arith.mulf %42, %28 : vector<2x64xf32>
    %47 = arith.mulf %41, %45 : vector<2x64xf32>
    %48 = arith.addf %46, %47 : vector<2x64xf32>
    %49 = math.tanh %48 : vector<2x64xf32>
    %50 = arith.mulf %43, %49 : vector<2x64xf32>
    %51 = arith.addf %31, %50 : vector<2x64xf32>
    %52 = vector.extract_strided_slice %7 {offsets = [2, 0, 0], sizes = [1, 2, 256], strides = [1, 1, 1]} : vector<8x2x256xf32> to vector<1x2x256xf32>
    %53 = vector.shape_cast %52 : vector<1x2x256xf32> to vector<2x256xf32>
    %cst_15 = arith.constant dense<0.000000e+00> : vector<2x256xf32>
    %54 = tpu.matmul %50, %8, %cst_15 {dimension_numbers = #tpu.dot_dimension_numbers<[1], [0], [0], [1], [0, 0, 1, 1], [], []>} : vector<2x64xf32>, vector<64x256xf32>, vector<2x256xf32> -> vector<2x256xf32>
    %55 = arith.addf %53, %54 : vector<2x256xf32>
    %56 = arith.negf %55 : vector<2x256xf32>
    %57 = math.exp %56 : vector<2x256xf32>
    %cst_16 = arith.constant 1.000000e+00 : f32
    %58 = vector.broadcast %cst_16 : f32 to vector<2x256xf32>
    %59 = arith.addf %58, %57 : vector<2x256xf32>
    %60 = arith.divf %58, %59 : vector<2x256xf32>
    %61 = vector.extract_strided_slice %60 {offsets = [0, 0], sizes = [2, 64], strides = [1, 1]} : vector<2x256xf32> to vector<2x64xf32>
    %62 = vector.extract_strided_slice %60 {offsets = [0, 64], sizes = [2, 64], strides = [1, 1]} : vector<2x256xf32> to vector<2x64xf32>
    %63 = vector.extract_strided_slice %60 {offsets = [0, 192], sizes = [2, 64], strides = [1, 1]} : vector<2x256xf32> to vector<2x64xf32>
    %64 = vector.extract_strided_slice %55 {offsets = [0, 128], sizes = [2, 64], strides = [1, 1]} : vector<2x256xf32> to vector<2x64xf32>
    %65 = math.tanh %64 : vector<2x64xf32>
    %66 = arith.mulf %62, %48 : vector<2x64xf32>
    %67 = arith.mulf %61, %65 : vector<2x64xf32>
    %68 = arith.addf %66, %67 : vector<2x64xf32>
    %69 = math.tanh %68 : vector<2x64xf32>
    %70 = arith.mulf %63, %69 : vector<2x64xf32>
    %71 = arith.addf %51, %70 : vector<2x64xf32>
    %72 = vector.extract_strided_slice %7 {offsets = [3, 0, 0], sizes = [1, 2, 256], strides = [1, 1, 1]} : vector<8x2x256xf32> to vector<1x2x256xf32>
    %73 = vector.shape_cast %72 : vector<1x2x256xf32> to vector<2x256xf32>
    %cst_17 = arith.constant dense<0.000000e+00> : vector<2x256xf32>
    %74 = tpu.matmul %70, %8, %cst_17 {dimension_numbers = #tpu.dot_dimension_numbers<[1], [0], [0], [1], [0, 0, 1, 1], [], []>} : vector<2x64xf32>, vector<64x256xf32>, vector<2x256xf32> -> vector<2x256xf32>
    %75 = arith.addf %73, %74 : vector<2x256xf32>
    %76 = arith.negf %75 : vector<2x256xf32>
    %77 = math.exp %76 : vector<2x256xf32>
    %cst_18 = arith.constant 1.000000e+00 : f32
    %78 = vector.broadcast %cst_18 : f32 to vector<2x256xf32>
    %79 = arith.addf %78, %77 : vector<2x256xf32>
    %80 = arith.divf %78, %79 : vector<2x256xf32>
    %81 = vector.extract_strided_slice %80 {offsets = [0, 0], sizes = [2, 64], strides = [1, 1]} : vector<2x256xf32> to vector<2x64xf32>
    %82 = vector.extract_strided_slice %80 {offsets = [0, 64], sizes = [2, 64], strides = [1, 1]} : vector<2x256xf32> to vector<2x64xf32>
    %83 = vector.extract_strided_slice %80 {offsets = [0, 192], sizes = [2, 64], strides = [1, 1]} : vector<2x256xf32> to vector<2x64xf32>
    %84 = vector.extract_strided_slice %75 {offsets = [0, 128], sizes = [2, 64], strides = [1, 1]} : vector<2x256xf32> to vector<2x64xf32>
    %85 = math.tanh %84 : vector<2x64xf32>
    %86 = arith.mulf %82, %68 : vector<2x64xf32>
    %87 = arith.mulf %81, %85 : vector<2x64xf32>
    %88 = arith.addf %86, %87 : vector<2x64xf32>
    %89 = math.tanh %88 : vector<2x64xf32>
    %90 = arith.mulf %83, %89 : vector<2x64xf32>
    %91 = arith.addf %71, %90 : vector<2x64xf32>
    %92 = vector.extract_strided_slice %7 {offsets = [4, 0, 0], sizes = [1, 2, 256], strides = [1, 1, 1]} : vector<8x2x256xf32> to vector<1x2x256xf32>
    %93 = vector.shape_cast %92 : vector<1x2x256xf32> to vector<2x256xf32>
    %cst_19 = arith.constant dense<0.000000e+00> : vector<2x256xf32>
    %94 = tpu.matmul %90, %8, %cst_19 {dimension_numbers = #tpu.dot_dimension_numbers<[1], [0], [0], [1], [0, 0, 1, 1], [], []>} : vector<2x64xf32>, vector<64x256xf32>, vector<2x256xf32> -> vector<2x256xf32>
    %95 = arith.addf %93, %94 : vector<2x256xf32>
    %96 = arith.negf %95 : vector<2x256xf32>
    %97 = math.exp %96 : vector<2x256xf32>
    %cst_20 = arith.constant 1.000000e+00 : f32
    %98 = vector.broadcast %cst_20 : f32 to vector<2x256xf32>
    %99 = arith.addf %98, %97 : vector<2x256xf32>
    %100 = arith.divf %98, %99 : vector<2x256xf32>
    %101 = vector.extract_strided_slice %100 {offsets = [0, 0], sizes = [2, 64], strides = [1, 1]} : vector<2x256xf32> to vector<2x64xf32>
    %102 = vector.extract_strided_slice %100 {offsets = [0, 64], sizes = [2, 64], strides = [1, 1]} : vector<2x256xf32> to vector<2x64xf32>
    %103 = vector.extract_strided_slice %100 {offsets = [0, 192], sizes = [2, 64], strides = [1, 1]} : vector<2x256xf32> to vector<2x64xf32>
    %104 = vector.extract_strided_slice %95 {offsets = [0, 128], sizes = [2, 64], strides = [1, 1]} : vector<2x256xf32> to vector<2x64xf32>
    %105 = math.tanh %104 : vector<2x64xf32>
    %106 = arith.mulf %102, %88 : vector<2x64xf32>
    %107 = arith.mulf %101, %105 : vector<2x64xf32>
    %108 = arith.addf %106, %107 : vector<2x64xf32>
    %109 = math.tanh %108 : vector<2x64xf32>
    %110 = arith.mulf %103, %109 : vector<2x64xf32>
    %111 = arith.addf %91, %110 : vector<2x64xf32>
    %112 = vector.extract_strided_slice %7 {offsets = [5, 0, 0], sizes = [1, 2, 256], strides = [1, 1, 1]} : vector<8x2x256xf32> to vector<1x2x256xf32>
    %113 = vector.shape_cast %112 : vector<1x2x256xf32> to vector<2x256xf32>
    %cst_21 = arith.constant dense<0.000000e+00> : vector<2x256xf32>
    %114 = tpu.matmul %110, %8, %cst_21 {dimension_numbers = #tpu.dot_dimension_numbers<[1], [0], [0], [1], [0, 0, 1, 1], [], []>} : vector<2x64xf32>, vector<64x256xf32>, vector<2x256xf32> -> vector<2x256xf32>
    %115 = arith.addf %113, %114 : vector<2x256xf32>
    %116 = arith.negf %115 : vector<2x256xf32>
    %117 = math.exp %116 : vector<2x256xf32>
    %cst_22 = arith.constant 1.000000e+00 : f32
    %118 = vector.broadcast %cst_22 : f32 to vector<2x256xf32>
    %119 = arith.addf %118, %117 : vector<2x256xf32>
    %120 = arith.divf %118, %119 : vector<2x256xf32>
    %121 = vector.extract_strided_slice %120 {offsets = [0, 0], sizes = [2, 64], strides = [1, 1]} : vector<2x256xf32> to vector<2x64xf32>
    %122 = vector.extract_strided_slice %120 {offsets = [0, 64], sizes = [2, 64], strides = [1, 1]} : vector<2x256xf32> to vector<2x64xf32>
    %123 = vector.extract_strided_slice %120 {offsets = [0, 192], sizes = [2, 64], strides = [1, 1]} : vector<2x256xf32> to vector<2x64xf32>
    %124 = vector.extract_strided_slice %115 {offsets = [0, 128], sizes = [2, 64], strides = [1, 1]} : vector<2x256xf32> to vector<2x64xf32>
    %125 = math.tanh %124 : vector<2x64xf32>
    %126 = arith.mulf %122, %108 : vector<2x64xf32>
    %127 = arith.mulf %121, %125 : vector<2x64xf32>
    %128 = arith.addf %126, %127 : vector<2x64xf32>
    %129 = math.tanh %128 : vector<2x64xf32>
    %130 = arith.mulf %123, %129 : vector<2x64xf32>
    %131 = arith.addf %111, %130 : vector<2x64xf32>
    %132 = vector.extract_strided_slice %7 {offsets = [6, 0, 0], sizes = [1, 2, 256], strides = [1, 1, 1]} : vector<8x2x256xf32> to vector<1x2x256xf32>
    %133 = vector.shape_cast %132 : vector<1x2x256xf32> to vector<2x256xf32>
    %cst_23 = arith.constant dense<0.000000e+00> : vector<2x256xf32>
    %134 = tpu.matmul %130, %8, %cst_23 {dimension_numbers = #tpu.dot_dimension_numbers<[1], [0], [0], [1], [0, 0, 1, 1], [], []>} : vector<2x64xf32>, vector<64x256xf32>, vector<2x256xf32> -> vector<2x256xf32>
    %135 = arith.addf %133, %134 : vector<2x256xf32>
    %136 = arith.negf %135 : vector<2x256xf32>
    %137 = math.exp %136 : vector<2x256xf32>
    %cst_24 = arith.constant 1.000000e+00 : f32
    %138 = vector.broadcast %cst_24 : f32 to vector<2x256xf32>
    %139 = arith.addf %138, %137 : vector<2x256xf32>
    %140 = arith.divf %138, %139 : vector<2x256xf32>
    %141 = vector.extract_strided_slice %140 {offsets = [0, 0], sizes = [2, 64], strides = [1, 1]} : vector<2x256xf32> to vector<2x64xf32>
    %142 = vector.extract_strided_slice %140 {offsets = [0, 64], sizes = [2, 64], strides = [1, 1]} : vector<2x256xf32> to vector<2x64xf32>
    %143 = vector.extract_strided_slice %140 {offsets = [0, 192], sizes = [2, 64], strides = [1, 1]} : vector<2x256xf32> to vector<2x64xf32>
    %144 = vector.extract_strided_slice %135 {offsets = [0, 128], sizes = [2, 64], strides = [1, 1]} : vector<2x256xf32> to vector<2x64xf32>
    %145 = math.tanh %144 : vector<2x64xf32>
    %146 = arith.mulf %142, %128 : vector<2x64xf32>
    %147 = arith.mulf %141, %145 : vector<2x64xf32>
    %148 = arith.addf %146, %147 : vector<2x64xf32>
    %149 = math.tanh %148 : vector<2x64xf32>
    %150 = arith.mulf %143, %149 : vector<2x64xf32>
    %151 = arith.addf %131, %150 : vector<2x64xf32>
    %152 = vector.extract_strided_slice %7 {offsets = [7, 0, 0], sizes = [1, 2, 256], strides = [1, 1, 1]} : vector<8x2x256xf32> to vector<1x2x256xf32>
    %153 = vector.shape_cast %152 : vector<1x2x256xf32> to vector<2x256xf32>
    %cst_25 = arith.constant dense<0.000000e+00> : vector<2x256xf32>
    %154 = tpu.matmul %150, %8, %cst_25 {dimension_numbers = #tpu.dot_dimension_numbers<[1], [0], [0], [1], [0, 0, 1, 1], [], []>} : vector<2x64xf32>, vector<64x256xf32>, vector<2x256xf32> -> vector<2x256xf32>
    %155 = arith.addf %153, %154 : vector<2x256xf32>
    %156 = arith.negf %155 : vector<2x256xf32>
    %157 = math.exp %156 : vector<2x256xf32>
    %cst_26 = arith.constant 1.000000e+00 : f32
    %158 = vector.broadcast %cst_26 : f32 to vector<2x256xf32>
    %159 = arith.addf %158, %157 : vector<2x256xf32>
    %160 = arith.divf %158, %159 : vector<2x256xf32>
    %161 = vector.extract_strided_slice %160 {offsets = [0, 0], sizes = [2, 64], strides = [1, 1]} : vector<2x256xf32> to vector<2x64xf32>
    %162 = vector.extract_strided_slice %160 {offsets = [0, 64], sizes = [2, 64], strides = [1, 1]} : vector<2x256xf32> to vector<2x64xf32>
    %163 = vector.extract_strided_slice %160 {offsets = [0, 192], sizes = [2, 64], strides = [1, 1]} : vector<2x256xf32> to vector<2x64xf32>
    %164 = vector.extract_strided_slice %155 {offsets = [0, 128], sizes = [2, 64], strides = [1, 1]} : vector<2x256xf32> to vector<2x64xf32>
    %165 = math.tanh %164 : vector<2x64xf32>
    %166 = arith.mulf %162, %148 : vector<2x64xf32>
    %167 = arith.mulf %161, %165 : vector<2x64xf32>
    %168 = arith.addf %166, %167 : vector<2x64xf32>
    %169 = math.tanh %168 : vector<2x64xf32>
    %170 = arith.mulf %163, %169 : vector<2x64xf32>
    %171 = arith.addf %151, %170 : vector<2x64xf32>
    %cst_27 = arith.constant 1.250000e-01 : f32
    %172 = vector.broadcast %cst_27 : f32 to vector<2x64xf32>
    %173 = arith.mulf %171, %172 : vector<2x64xf32>
    %cst_28 = arith.constant dense<0.000000e+00> : vector<2xf32>
    %174 = vector.multi_reduction <add>, %173, %cst_28 [1] : vector<2x64xf32> to vector<2xf32>
    %175 = vector.shape_cast %174 : vector<2xf32> to vector<2x1xf32>
    %cst_29 = arith.constant 6.400000e+01 : f32
    %176 = vector.broadcast %cst_29 : f32 to vector<2x1xf32>
    %177 = arith.divf %175, %176 : vector<2x1xf32>
    %178 = vector.broadcast %177 : vector<2x1xf32> to vector<2x64xf32>
    %179 = arith.subf %173, %178 : vector<2x64xf32>
    %180 = arith.mulf %179, %179 : vector<2x64xf32>
    %cst_30 = arith.constant dense<0.000000e+00> : vector<2xf32>
    %181 = vector.multi_reduction <add>, %180, %cst_30 [1] : vector<2x64xf32> to vector<2xf32>
    %182 = vector.shape_cast %181 : vector<2xf32> to vector<2x1xf32>
    %cst_31 = arith.constant 6.400000e+01 : f32
    %183 = vector.broadcast %cst_31 : f32 to vector<2x1xf32>
    %184 = arith.divf %182, %183 : vector<2x1xf32>
    %185 = vector.broadcast %177 : vector<2x1xf32> to vector<2x64xf32>
    %186 = arith.subf %173, %185 : vector<2x64xf32>
    %cst_32 = arith.constant 9.99999974E-6 : f32
    %187 = vector.broadcast %cst_32 : f32 to vector<2x1xf32>
    %188 = arith.addf %184, %187 : vector<2x1xf32>
    %189 = math.rsqrt %188 : vector<2x1xf32>
    %190 = vector.broadcast %189 : vector<2x1xf32> to vector<2x64xf32>
    %191 = arith.mulf %186, %190 : vector<2x64xf32>
    %c0_33 = arith.constant 0 : index
    %c0_34 = arith.constant 0 : index
    %192 = vector.load %arg4[%c0_33, %c0_34] : memref<1x64xf32, #tpu.memory_space<vmem>>, vector<1x64xf32>
    %193 = vector.broadcast %192 : vector<1x64xf32> to vector<2x64xf32>
    %194 = arith.mulf %191, %193 : vector<2x64xf32>
    %c0_35 = arith.constant 0 : index
    %c0_36 = arith.constant 0 : index
    %195 = vector.load %arg5[%c0_35, %c0_36] : memref<1x64xf32, #tpu.memory_space<vmem>>, vector<1x64xf32>
    %196 = vector.broadcast %195 : vector<1x64xf32> to vector<2x64xf32>
    %197 = arith.addf %194, %196 : vector<2x64xf32>
    %c0_37 = arith.constant 0 : index
    %c0_38 = arith.constant 0 : index
    %198 = vector.load %arg6[%c0_37, %c0_38] : memref<64x128xf32, #tpu.memory_space<vmem>>, vector<64x128xf32>
    %cst_39 = arith.constant dense<0.000000e+00> : vector<2x128xf32>
    %199 = tpu.matmul %197, %198, %cst_39 {dimension_numbers = #tpu.dot_dimension_numbers<[1], [0], [0], [1], [0, 0, 1, 1], [], []>} : vector<2x64xf32>, vector<64x128xf32>, vector<2x128xf32> -> vector<2x128xf32>
    %c0_40 = arith.constant 0 : index
    %c0_41 = arith.constant 0 : index
    %200 = vector.load %arg7[%c0_40, %c0_41] : memref<1x128xf32, #tpu.memory_space<vmem>>, vector<1x128xf32>
    %201 = vector.broadcast %200 : vector<1x128xf32> to vector<2x128xf32>
    %202 = arith.addf %199, %201 : vector<2x128xf32>
    %203 = tpu.iota {dimensions = array<i32: 1>} : vector<2x128xi32>
    %c4_i32 = arith.constant 4 : i32
    %204 = vector.broadcast %c4_i32 : i32 to vector<2x128xi32>
    %205 = arith.cmpi slt, %203, %204 : vector<2x128xi32>
    %cst_42 = arith.constant -1.000000e+30 : f32
    %206 = vector.broadcast %cst_42 : f32 to vector<2x128xf32>
    %207 = arith.select %205, %202, %206 : vector<2x128xi1>, vector<2x128xf32>
    %cst_43 = arith.constant dense<0xFF800000> : vector<2xf32>
    %208 = vector.multi_reduction <maximumf>, %207, %cst_43 [1] : vector<2x128xf32> to vector<2xf32>
    %209 = vector.shape_cast %208 : vector<2xf32> to vector<2x1xf32>
    %210 = vector.broadcast %209 : vector<2x1xf32> to vector<2x128xf32>
    %211 = arith.subf %207, %210 : vector<2x128xf32>
    %212 = math.exp %211 : vector<2x128xf32>
    %cst_44 = arith.constant dense<0.000000e+00> : vector<2xf32>
    %213 = vector.multi_reduction <add>, %212, %cst_44 [1] : vector<2x128xf32> to vector<2xf32>
    %214 = vector.shape_cast %213 : vector<2xf32> to vector<2x1xf32>
    %215 = vector.broadcast %214 : vector<2x1xf32> to vector<2x128xf32>
    %216 = arith.divf %212, %215 : vector<2x128xf32>
    %c0_45 = arith.constant 0 : index
    %c0_46 = arith.constant 0 : index
    %217 = vector.load %arg8[%c0_45, %c0_46] : memref<2x128xf32, #tpu.memory_space<vmem>>, vector<2x128xf32>
    tpu.vector_store %arg8[%c0_45, %c0_46], %216 {strides = array<i32>} : memref<2x128xf32, #tpu.memory_space<vmem>>, vector<2x128xf32>,
    return
  }
}

</mosaic_0001>

<bundles_post_ra>
// kernel: tpu_custom_call.1
= control target key start
LH: loop header
LB: loop body
LE: loop exit
PB: predicated region body
PF: predicated region fallthrough
CT: control target
= control target key end

     0   :  { %13 = vsyncpa [#allocation3], 0  ;;  %s1703_s0 = inlined_call_operand.hbm [shape: f32[8,2,64], index: 0, kind: input, shape index: {}]   ;;  %s1704_s1 = inlined_call_operand.hbm [shape: f32[64,256], index: 1, kind: input, shape index: {}]   ;;  %s1705_s2 = inlined_call_operand.hbm [shape: f32[64,256], index: 2, kind: input, shape index: {}]   ;;  %s1706_s3 = inlined_call_operand.vmem [shape: f32[1,256], index: 3, kind: input, shape index: {}]   ;;  %s1707_s4 = inlined_call_operand.vmem [shape: f32[1,64], index: 4, kind: input, shape index: {}]   ;;  %s1708_s5 = inlined_call_operand.vmem [shape: f32[1,64], index: 5, kind: input, shape index: {}]   ;;  %s1709_s6 = inlined_call_operand.hbm [shape: f32[64,128], index: 6, kind: input, shape index: {}]   ;;  %s1710_s7 = inlined_call_operand.vmem [shape: f32[1,128], index: 7, kind: input, shape index: {}]   ;;  %s1711_s8 = inlined_call_operand.hbm [shape: f32[2,128], index: 8, kind: output, shape index: {}]  }
   0x1   :  { %14 = vsyncpa [#allocation6], 0 }
   0x2   :  { %15 = vsyncpa [#allocation9], 0  ;;  %s34_s29 = sshll.u32 %s1704_s1, 4  ;;  %s35_s29 = int_to_ptr.hbm [resolvable:$true] %s34_s29 }
   0x3   :  { %16 = vsyncpa [#allocation4], 0  ;;  %s1343_s30 = smov [#allocation5]   ;;  %s21_s12 = sshll.u32 %s1703_s0, 4  ;;  %s22_s12 = int_to_ptr.hbm [resolvable:$true] %s21_s12 }
   0x4   :  { %s36_s9 = sshll.u32 %s1343_s30, 4  ;;  %s1344_s13 = smov 256   ;;  %s37_s9 = int_to_ptr.vmem [resolvable:$true] %s36_s9 }
   0x5   :  { %s1345_s14 = smov 16   ;;  %s1346_s15 = smov [#allocation2]  }
   0x6   :  { %42 = dma.hbm_to_vmem [thread:$0]  %s35_s29, 2048, %s37_s9, [#allocation6], %s1344_s13, %s1344_s13, %s1345_s14  }
   0x7   :  { %s23_s16 = sshll.u32 %s1346_s15, 4  ;;  %s1347_s17 = smov 32   ;;  %s24_s16 = int_to_ptr.vmem [resolvable:$true] %s23_s16 }
   0x8   :  { %s1348_s18 = smov 2   ;;  %s47_s20 = sshll.u32 %s1705_s2, 4  ;;  %s48_s20 = int_to_ptr.hbm [resolvable:$true] %s47_s20 }
   0x9   :  { %29 = dma.hbm_to_vmem [thread:$0]  %s22_s12, 256, %s24_s16, [#allocation3], %s1347_s17, %s1347_s17, %s1348_s18  }
   0xa   :  { %s1349_s21 = smov [#allocation7]   ;;  %s66_s24 = sshll.u32 %s1709_s6, 4  ;;  %s67_s24 = int_to_ptr.hbm [resolvable:$true] %s66_s24 }
   0xb   :  { %s49_s22 = sshll.u32 %s1349_s21, 4  ;;  %s1350_s25 = smov [#allocation8]   ;;  %s50_s22 = int_to_ptr.vmem [resolvable:$true] %s49_s22 }
   0xc   :  { %55 = dma.hbm_to_vmem [thread:$0]  %s48_s20, 2048, %s50_s22, [#allocation6], %s1344_s13, %s1344_s13, %s1345_s14  }
   0xd   :  { %s68_s26 = sshll.u32 %s1350_s25, 4  ;;  %s1351_s27 = smov 128   ;;  %s69_s26 = int_to_ptr.vmem [resolvable:$true] %s68_s26 }
   0xe   :  { %s1352_s28 = smov 8  }
   0xf   :  { %74 = dma.hbm_to_vmem [thread:$0]  %s67_s24, 1024, %s69_s26, [#allocation9], %s1351_s27, %s1351_s27, %s1352_s28  }
  0x10   :  { %1335 = dma.done.wait [#allocation3], 256  }
  0x11   :  { %1336 = vsyncadd [#allocation3], 4294967040 }
  0x12   :  { %1337 = dma.done.wait [#allocation6], 4096  }
  0x13   :  { %1338 = vsyncadd [#allocation6], 4294963200 }
  0x14   :  { %1339 = dma.done.wait [#allocation9], 1024  }
  0x15   :  { %1340 = vsyncadd [#allocation9], 4294966272  ;;  %v1414_v0 = vld [vmem:[#allocation7 + $0x78] sm:$0xff]  ;;  %v1416_v1 = vld [vmem:[#allocation7 + $0x70] sm:$0xff]  ;;  %v1353_v35 = vmov 0.0   ;;  %vm148_vm0 = vcmask 523264  }
  0x16   :  { %v1418_v2 = vld [vmem:[#allocation7 + $0x68] sm:$0xff]  ;;  %278 = vmatpush.msra.mxu3 %v1414_v0  ;;  %258 = vmatpush.msra.mxu2 %v1416_v1  ;;  %v116_v3 = vld [vmem:[#allocation5 + $0x78] sm:$0xff]  ;;  %v1422_v4 = vld [vmem:[#allocation7 + $0x60] sm:$0xff]  ;;  %vm205_vm1 = vcmask 1041408   ;;  %vm207_vm2 = vcmask 1043458   ;;  %vm210_vm3 = vcmask 1045508  }
  0x17   :  { %v1424_v5 = vld [vmem:[#allocation7 + $0x58] sm:$0xff]  ;;  %184 = vmatpush.msra.mxu1 %v116_v3  ;;  %v115_v6 = vld [vmem:[#allocation5 + $0x70] sm:$0xff]  ;;  %v114_v7 = vld [vmem:[#allocation5 + $0x68] sm:$0xff]  ;;  %vm213_vm4 = vcmask 1045504   ;;  %s1087_s14 = sshll.u32 %s1711_s8, 4  ;;  %s1088_s14 = int_to_ptr.hbm [resolvable:$true] %s1087_s14 }
  0x18   :  { %v1426_v8 = vld [vmem:[#allocation7 + $0x50] sm:$0xff]  ;;  %279 = vmatpush.msra.mxu3 %v1418_v2  ;;  %259 = vmatpush.msra.mxu2 %v1422_v4  ;;  %v113_v9 = vld [vmem:[#allocation5 + $0x60] sm:$0xff]  ;;  %v112_v10 = vld [vmem:[#allocation5 + $0x58] sm:$0xff] }
  0x19   :  { %161 = vmatpush.msra.mxu0 %v115_v6  ;;  %185 = vmatpush.msra.mxu1 %v114_v7  ;;  %v1430_v11 = vld [vmem:[#allocation7 + $0x48] sm:$0xff]  ;;  %v1432_v12 = vld [vmem:[#allocation7 + $0x40] sm:$0xff]  ;;  %v111_v13 = vld [vmem:[#allocation5 + $0x50] sm:$0xff] }
  0x1a   :  { %280 = vmatpush.msra.mxu3 %v1424_v5  ;;  %260 = vmatpush.msra.mxu2 %v1426_v8  ;;  %v110_v14 = vld [vmem:[#allocation5 + $0x48] sm:$0xff]  ;;  %v1436_v15 = vld [vmem:[#allocation7 + $0x38] sm:$0xff]  ;;  %v1438_v16 = vld [vmem:[#allocation7 + $0x30] sm:$0xff] }
  0x1b   :  { %162 = vmatpush.msra.mxu0 %v113_v9  ;;  %186 = vmatpush.msra.mxu1 %v112_v10  ;;  %v1442_v17 = vld [vmem:[#allocation7 + $0x28] sm:$0xff]  ;;  %v109_v18 = vld [vmem:[#allocation5 + $0x40] sm:$0xff]  ;;  %v108_v19 = vld [vmem:[#allocation5 + $0x38] sm:$0xff] }
  0x1c   :  { %281 = vmatpush.msra.mxu3 %v1430_v11  ;;  %261 = vmatpush.msra.mxu2 %v1432_v12  ;;  %v1444_v20 = vld [vmem:[#allocation7 + $0x20] sm:$0xff]  ;;  %v1446_v21 = vld [vmem:[#allocation7 + $0x18] sm:$0xff]  ;;  %v107_v22 = vld [vmem:[#allocation5 + $0x30] sm:$0xff] }
  0x1d   :  { %163 = vmatpush.msra.mxu0 %v111_v13  ;;  %187 = vmatpush.msra.mxu1 %v110_v14  ;;  %v106_v23 = vld [vmem:[#allocation5 + $0x28] sm:$0xff]  ;;  %v1450_v24 = vld [vmem:[#allocation7 + $0x10] sm:$0xff]  ;;  %v105_v25 = vld [vmem:[#allocation5 + $0x20] sm:$0xff] }
  0x1e   :  { %282 = vmatpush.msra.mxu3 %v1436_v15  ;;  %262 = vmatpush.msra.mxu2 %v1438_v16  ;;  %v104_v26 = vld [vmem:[#allocation5 + $0x18] sm:$0xff]  ;;  %v93_v27 = vld [vmem:[#allocation2] sm:$0x3]  ;;  %v94_v28 = vld [vmem:[#allocation2 + $0x2] sm:$0x3] }
  0x1f   :  { %164 = vmatpush.msra.mxu0 %v109_v18  ;;  %188 = vmatpush.msra.mxu1 %v108_v19  ;;  %v95_v29 = vld [vmem:[#allocation2 + $0x4] sm:$0x3]  ;;  %v96_v30 = vld [vmem:[#allocation2 + $0x6] sm:$0x3]  ;;  %131 = vst [vmem:[#allocation1] ss:$4 sm:$0xff] %v93_v27 }
  0x20   :  { %283 = vmatpush.msra.mxu3 %v1442_v17  ;;  %263 = vmatpush.msra.mxu2 %v1444_v20  ;;  %v1454_v31 = vld [vmem:[#allocation7 + $0x8] sm:$0xff]  ;;  %v1456_v32 = vld [vmem:[#allocation7] sm:$0xff]  ;;  %133 = vst [vmem:[#allocation1 + $0x1] ss:$4 sm:$0xff] %v94_v28  ;;  %v103_v33 = vld [vmem:[#allocation5 + $0x10] sm:$0xff] }
  0x21   :  { %165 = vmatpush.msra.mxu0 %v107_v22  ;;  %189 = vmatpush.msra.mxu1 %v106_v23  ;;  %v102_v34 = vld [vmem:[#allocation5 + $0x8] sm:$0xff]  ;;  %135 = vst [vmem:[#allocation1 + $0x2] ss:$4 sm:$0xff] %v95_v29  ;;  %v101_v36 = vld [vmem:[#allocation5] sm:$0xff]  ;;  %v97_v18 = vld [vmem:[#allocation2 + $0x8] sm:$0x3] }
  0x22   :  { %284 = vmatpush.msra.mxu3 %v1446_v21  ;;  %264 = vmatpush.msra.mxu2 %v1450_v24  ;;  %137 = vst [vmem:[#allocation1 + $0x3] ss:$4 sm:$0xff] %v96_v30  ;;  %v1531_v38 = vld [vmem:[%s1706_s3] sm:$0x3]  ;;  %s1354_s3 = smov 64  }
  0x23   :  { %166 = vmatpush.msra.mxu0 %v105_v25  ;;  %190 = vmatpush.msra.mxu1 %v104_v26  ;;  %v120_v39 = vperm.slane %v1531_v38, 1  ;;  %v119_v40 = vperm.slane %v1531_v38, 0  ;;  %v98_v19 = vld [vmem:[#allocation2 + $0xa] sm:$0x3]  ;;  %v99_v22 = vld [vmem:[#allocation2 + $0xc] sm:$0x3] }
  0x24   :  { %285 = vmatpush.msra.mxu3 %v1454_v31  ;;  %265 = vmatpush.msra.mxu2 %v1456_v32  ;;  %v100_v23 = vld [vmem:[#allocation2 + $0xe] sm:$0x3]  ;;  %139 = vst [vmem:[#allocation1 + $0x20] ss:$4 sm:$0xff] %v97_v18 }
  0x25   :  { %286 = vmatmul.f32.vlgmr.msra.gmra.mxu3 %v1353_v35  ;;  %266 = vmatmul.f32.vlgmr.msra.gmra.mxu2 %v1353_v35  ;;  %141 = vst [vmem:[#allocation1 + $0x21] ss:$4 sm:$0xff] %v98_v19 }
  0x26   :  { %167 = vmatpush.msra.mxu0 %v103_v33  ;;  %191 = vmatpush.msra.mxu1 %v102_v34  ;;  %143 = vst [vmem:[#allocation1 + $0x22] ss:$4 sm:$0xff] %v99_v22 }
  0x27   :  { %440 = vmatpush.msrb.mxu2 %v1416_v1  ;;  %460 = vmatpush.msrb.mxu3 %v1414_v0  ;;  %145 = vst [vmem:[#allocation1 + $0x23] ss:$4 sm:$0xff] %v100_v23 }
  0x28   :  { %369 = vmatpush.msrb.mxu1 %v1414_v0  ;;  %168 = vmatpush.msra.mxu0 %v101_v36 }
  0x29   :  { %v146_v37 = vld.sshfl [vmem:[#allocation1] sm:$0xff pattern:$0x73625140]  ;;  %441 = vmatpush.msrb.mxu2 %v1422_v4  ;;  %461 = vmatpush.msrb.mxu3 %v1418_v2 }
  0x2a   :  { %349 = vmatpush.msrb.mxu0 %v1416_v1  ;;  %370 = vmatpush.msrb.mxu1 %v1418_v2 }
  0x2b   :  { %1101 = vmatmul.msk.f32.vlgmr.msra.gmra.mxu1 %vm148_vm0, %v146_v37  ;;  %1099 = vmatmul.msk.f32.vlgmr.msra.gmra.mxu0 %vm148_vm0, %v146_v37 }
  0x2c   :  { %350 = vmatpush.msrb.mxu0 %v1422_v4  ;;  %371 = vmatpush.msrb.mxu1 %v1424_v5 }
  0x2d   :  { %442 = vmatpush.msrb.mxu2 %v1426_v8  ;;  %462 = vmatpush.msrb.mxu3 %v1424_v5 }
  0x2e   :  { %351 = vmatpush.msrb.mxu0 %v1426_v8  ;;  %372 = vmatpush.msrb.mxu1 %v1430_v11  ;;  %v147_v25 = vld.sshfl [vmem:[#allocation1 + $0x20] sm:$0xff pattern:$0x73625140] }
  0x2f   :  { %443 = vmatpush.msrb.mxu2 %v1432_v12  ;;  %463 = vmatpush.msrb.mxu3 %v1430_v11 }
  0x30   :  { %352 = vmatpush.msrb.mxu0 %v1432_v12  ;;  %373 = vmatpush.msrb.mxu1 %v1436_v15 }
  0x31   :  { %444 = vmatpush.msrb.mxu2 %v1438_v16  ;;  %464 = vmatpush.msrb.mxu3 %v1436_v15 }
  0x32   :  { %353 = vmatpush.msrb.mxu0 %v1438_v16  ;;  %374 = vmatpush.msrb.mxu1 %v1442_v17 }
  0x33   :  { %445 = vmatpush.msrb.mxu2 %v1444_v20  ;;  %465 = vmatpush.msrb.mxu3 %v1442_v17 }
  0x34   :  { %354 = vmatpush.msrb.mxu0 %v1444_v20  ;;  %375 = vmatpush.msrb.mxu1 %v1446_v21 }
  0x35   :  { %446 = vmatpush.msrb.mxu2 %v1450_v24  ;;  %466 = vmatpush.msrb.mxu3 %v1446_v21 }
  0x36   :  { %355 = vmatpush.msrb.mxu0 %v1450_v24  ;;  %376 = vmatpush.msrb.mxu1 %v1454_v31 }
  0x37   :  { %447 = vmatpush.msrb.mxu2 %v1456_v32  ;;  %467 = vmatpush.msrb.mxu3 %v1454_v31 }
  0x38   :  { %356 = vmatpush.msrb.mxu0 %v1456_v32  ;;  %551 = vmatpush.msra.mxu1 %v1414_v0 }
  0x39   :  { %622 = vmatpush.msra.mxu2 %v1416_v1  ;;  %642 = vmatpush.msra.mxu3 %v1414_v0 }
  0x3a   :  { %531 = vmatpush.msra.mxu0 %v1416_v1  ;;  %552 = vmatpush.msra.mxu1 %v1418_v2 }
  0x3b   :  { %623 = vmatpush.msra.mxu2 %v1422_v4  ;;  %643 = vmatpush.msra.mxu3 %v1418_v2 }
  0x3c   :  { %532 = vmatpush.msra.mxu0 %v1422_v4  ;;  %553 = vmatpush.msra.mxu1 %v1424_v5 }
  0x3d   :  { %624 = vmatpush.msra.mxu2 %v1426_v8  ;;  %644 = vmatpush.msra.mxu3 %v1424_v5 }
  0x3e   :  { %533 = vmatpush.msra.mxu0 %v1426_v8  ;;  %554 = vmatpush.msra.mxu1 %v1430_v11 }
  0x3f   :  { %625 = vmatpush.msra.mxu2 %v1432_v12  ;;  %645 = vmatpush.msra.mxu3 %v1430_v11 }
  0x40   :  { %534 = vmatpush.msra.mxu0 %v1432_v12  ;;  %555 = vmatpush.msra.mxu1 %v1436_v15 }
  0x41   :  { %626 = vmatpush.msra.mxu2 %v1438_v16  ;;  %646 = vmatpush.msra.mxu3 %v1436_v15 }
  0x42   :  { %535 = vmatpush.msra.mxu0 %v1438_v16  ;;  %556 = vmatpush.msra.mxu1 %v1442_v17 }
  0x43   :  { %627 = vmatpush.msra.mxu2 %v1444_v20  ;;  %647 = vmatpush.msra.mxu3 %v1442_v17 }
  0x44   :  { %536 = vmatpush.msra.mxu0 %v1444_v20  ;;  %557 = vmatpush.msra.mxu1 %v1446_v21 }
  0x45   :  { %628 = vmatpush.msra.mxu2 %v1450_v24  ;;  %648 = vmatpush.msra.mxu3 %v1446_v21 }
  0x46   :  { %537 = vmatpush.msra.mxu0 %v1450_v24  ;;  %558 = vmatpush.msra.mxu1 %v1454_v31 }
  0x47   :  { %629 = vmatpush.msra.mxu2 %v1456_v32  ;;  %649 = vmatpush.msra.mxu3 %v1454_v31 }
  0x48   :  { %538 = vmatpush.msra.mxu0 %v1456_v32  ;;  %1102 = vmatmul.msk.f32.gmra.mxu1 %vm148_vm0, %v147_v25 }
  0x49   :  { %1100 = vmatmul.msk.f32.gmra.mxu0 %vm148_vm0, %v147_v25 }
  0xa8   :  { %v193_v41 = vpop.f32.mrf.mxu1  ;;  %v170_v42 = vpop.f32.mrf.mxu0 }
  0xa9   :  { %v194_v43 = vadd.f32 %v193_v41, %v120_v39  ;;  %v171_v44 = vadd.f32 %v170_v42, %v119_v40  ;;  %v287_v45 = vpop.f32.mrf.mxu3  ;;  %v267_v46 = vpop.f32.mrf.mxu2 }
  0xaa   :  { %v292_v47 = vrot.slane %v287_v45, 6 }
  0xab   :  { %v203_v48 = vrot.slane %v194_v43, 6 }
  0xac   :  { %v293_v49 = vsel %vm205_vm1, %v267_v46, %v292_v47 }
  0xad   :  { %v206_v50 = vsel %vm205_vm1, %v171_v44, %v203_v48  ;;  %v1542_v51 = vsel %vm207_vm2, %v171_v44, %v203_v48  ;;  %v1545_v52 = vsel %vm210_vm3, %v171_v44, %v203_v48  ;;  %v1548_v53 = vsel %vm213_vm4, %v203_v48, %v171_v44 }
  0xae   :  { %v295_v54 = vadd.f32 %v293_v49, %v206_v50  ;;  %v209_v47 = vrot.slane %v1542_v51, 2 }
  0xb0   :  { %v1103_v55 = vmul.f32 -1.442695, %v295_v54  ;;  %v316_v59 = vrot.slane %v295_v54, 2 }
  0xb2   :  { %1143 = vpow2.f32 %v1103_v55 }
  0xb8   :  { %v1144_v56 = vpop.eup %1143 }
  0xb9   :  { %v299_v57 = vadd.f32 1.0, %v1144_v56 }
  0xbb   :  { %1145 = vrcp.f32 %v299_v57  ;;  %v311_v62 = vand.u32 2147483648, %v299_v57  ;;  %v309_v3 = vand.u32 2147483647, %v299_v57  ;;  %vm305_vm6 = vweird.f32 %v299_v57 }
  0xbc   :  { %1147 = vtanh.f32 %v316_v59 }
  0xbd   :  { %v312_v7 = vor.u32 1.1754944e-38, %v311_v62  ;;  %vm310_vm8 = vcmp.eq.f32.partialorder %v309_v3, 8.507059e+37 }
  0xc1   :  { %v1146_v58 = vpop.eup %1145 }
  0xc2   :  { %v301_v60 = vmul.f32 %v1146_v58, %v299_v57  ;;  %vm306_vm5 = vweird.f32 %v1146_v58  ;;  %v1148_v10 = vpop.eup %1147 }
  0xc3   :  { %vm307_vm7 = vmor %vm305_vm6, %vm306_vm5 }
  0xc4   :  { %v302_v61 = vsub.f32 1.0, %v301_v60 }
  0xc5   :  { %v196_v36 = vpop.f32.mrf.mxu1 }
  0xc6   :  { %v303_v63 = vmul.f32 %v1146_v58, %v302_v61  ;;  %v197_v37 = vadd.f32 %v196_v36, %v120_v39  ;;  %v173_v41 = vpop.f32.mrf.mxu0 }
  0xc7   :  { %v1584_v42 = vadd.f32 %v173_v41, %v119_v40 }
  0xc8   :  { %v304_v6 = vadd.f32 %v1146_v58, %v303_v63  ;;  %v1586_v43 = vrot.slane %v197_v37, 6 }
  0xca   :  { %v308_v9 = vsel %vm307_vm7, %v1146_v58, %v304_v6  ;;  %v1591_v44 = vsel %vm207_vm2, %v1584_v42, %v1586_v43  ;;  %v1596_v45 = vsel %vm210_vm3, %v1584_v42, %v1586_v43  ;;  %v1601_v39 = vsel %vm213_vm4, %v1586_v43, %v1584_v42 }
  0xcb   :  { %v313_v13 = vsel %vm310_vm8, %v312_v7, %v308_v9 }
  0xcc   :  { %v320_v14 = vmul.f32 %v1148_v10, %v313_v13  ;;  %v319_v26 = vmul.f32 0.0, %v313_v13 }
  0xce   :  { %322 = vrot.lane.b32.xlu0 %v320_v14, %s1354_s3 }
  0xd6   :  { %328 = vrot.lane.b32.xlu0 %v313_v13, %s1354_s3 }
 0x140   :  { %v323_v27 = vpop.permute.xlu0 %322 }
 0x141   :  { %v1554_v28 = vadd.f32 %v323_v27, %v319_v26 }
 0x143   :  { %1149 = vtanh.f32 %v1554_v28 }
 0x148   :  { %v329_v30 = vpop.permute.xlu0 %328 }
 0x149   :  { %v1150_v29 = vpop.eup %1149  ;;  %v330_v33 = vrot.slane %v329_v30, 2 }
 0x14a   :  { %333 = vrot.lane.b32.xlu1 %v1150_v29, %s1354_s3  ;;  %v212_v29 = vrot.slane %v1545_v52, 4 }
 0x1bc   :  { %v334_v34 = vpop.permute.xlu1 %333 }
 0x1bd   :  { %v1558_v35 = vmul.f32 %v334_v34, %v330_v33 }
 0x1bf   :  { %1104 = vmatmul.msk.f32.vlgmr.msrb.gmra.mxu0 %vm148_vm0, %v1558_v35  ;;  %1105 = vmatmul.msk.f32.vlgmr.msrb.gmra.mxu1 %vm148_vm0, %v1558_v35 }
 0x1c0   :  { %713 = vmatpush.msrb.mxu0 %v1416_v1  ;;  %733 = vmatpush.msrb.mxu1 %v1414_v0 }
 0x1c2   :  { %714 = vmatpush.msrb.mxu0 %v1422_v4  ;;  %734 = vmatpush.msrb.mxu1 %v1418_v2 }
 0x1c4   :  { %715 = vmatpush.msrb.mxu0 %v1426_v8  ;;  %735 = vmatpush.msrb.mxu1 %v1424_v5 }
 0x1c6   :  { %716 = vmatpush.msrb.mxu0 %v1432_v12  ;;  %736 = vmatpush.msrb.mxu1 %v1430_v11 }
 0x1c8   :  { %717 = vmatpush.msrb.mxu0 %v1438_v16  ;;  %737 = vmatpush.msrb.mxu1 %v1436_v15 }
 0x1ca   :  { %718 = vmatpush.msrb.mxu0 %v1444_v20  ;;  %738 = vmatpush.msrb.mxu1 %v1442_v17 }
 0x1cc   :  { %719 = vmatpush.msrb.mxu0 %v1450_v24  ;;  %739 = vmatpush.msrb.mxu1 %v1446_v21 }
 0x1ce   :  { %720 = vmatpush.msrb.mxu0 %v1456_v32  ;;  %740 = vmatpush.msrb.mxu1 %v1454_v31 }
 0x23c   :  { %v378_v38 = vpop.f32.mrf.mxu1  ;;  %v358_v46 = vpop.f32.mrf.mxu0 }
 0x23d   :  { %v383_v40 = vrot.slane %v378_v38, 6 }
 0x23f   :  { %v384_v48 = vsel %vm205_vm1, %v358_v46, %v383_v40 }
 0x240   :  { %v386_v49 = vadd.f32 %v384_v48, %v209_v47 }
 0x242   :  { %v1106_v50 = vmul.f32 -1.442695, %v386_v49  ;;  %v407_v57 = vrot.slane %v386_v49, 2 }
 0x244   :  { %1151 = vpow2.f32 %v1106_v50 }
 0x24a   :  { %v1152_v54 = vpop.eup %1151 }
 0x24b   :  { %v390_v55 = vadd.f32 1.0, %v1152_v54 }
 0x24d   :  { %1153 = vrcp.f32 %v390_v55  ;;  %v402_v60 = vand.u32 2147483648, %v390_v55  ;;  %v400_v62 = vand.u32 2147483647, %v390_v55  ;;  %vm396_vm10 = vweird.f32 %v390_v55 }
 0x24e   :  { %1155 = vtanh.f32 %v407_v57 }
 0x24f   :  { %v403_v51 = vor.u32 1.1754944e-38, %v402_v60  ;;  %vm401_vm12 = vcmp.eq.f32.partialorder %v400_v62, 8.507059e+37 }
 0x253   :  { %v1154_v56 = vpop.eup %1153 }
 0x254   :  { %v392_v58 = vmul.f32 %v1154_v56, %v390_v55  ;;  %vm397_vm9 = vweird.f32 %v1154_v56  ;;  %v1156_v6 = vpop.eup %1155 }
 0x255   :  { %vm398_vm11 = vmor %vm396_vm10, %vm397_vm9 }
 0x256   :  { %v393_v59 = vsub.f32 1.0, %v392_v58 }
 0x258   :  { %v394_v61 = vmul.f32 %v1154_v56, %v393_v59 }
 0x25a   :  { %v395_v63 = vadd.f32 %v1154_v56, %v394_v61 }
 0x25c   :  { %v399_v3 = vsel %vm398_vm11, %v1154_v56, %v395_v63 }
 0x25d   :  { %v404_v7 = vsel %vm401_vm12, %v403_v51, %v399_v3 }
 0x25e   :  { %419 = vrot.lane.b32.xlu2 %v404_v7, %s1354_s3  ;;  %v411_v9 = vmul.f32 %v1156_v6, %v404_v7  ;;  %v410_v10 = vmul.f32 %v404_v7, %v1554_v28 }
 0x260   :  { %413 = vrot.lane.b32.xlu1 %v411_v9, %s1354_s3 }
 0x2b8   :  { %v420_v19 = vpop.permute.xlu2 %419 }
 0x2b9   :  { %v421_v22 = vrot.slane %v420_v19, 2 }
 0x2d2   :  { %v414_v13 = vpop.permute.xlu1 %413 }
 0x2d3   :  { %v416_v14 = vadd.f32 %v414_v13, %v410_v10 }
 0x2d5   :  { %1157 = vtanh.f32 %v416_v14 }
 0x2db   :  { %v1158_v18 = vpop.eup %1157 }
 0x2dc   :  { %424 = vrot.lane.b32.xlu2 %v1158_v18, %s1354_s3 }
 0x336   :  { %v425_v23 = vpop.permute.xlu2 %424 }
 0x337   :  { %v427_v25 = vmul.f32 %v425_v23, %v421_v22 }
 0x339   :  { %1107 = vmatmul.msk.f32.vlgmr.msrb.gmra.mxu2 %vm148_vm0, %v427_v25  ;;  %1108 = vmatmul.msk.f32.vlgmr.msrb.gmra.mxu3 %vm148_vm0, %v427_v25  ;;  %v428_v3 = vadd.f32 %v427_v25, %v1558_v35 }
 0x33a   :  { %804 = vmatpush.msrb.mxu2 %v1416_v1  ;;  %824 = vmatpush.msrb.mxu3 %v1414_v0 }
 0x33c   :  { %805 = vmatpush.msrb.mxu2 %v1422_v4  ;;  %825 = vmatpush.msrb.mxu3 %v1418_v2 }
 0x33e   :  { %806 = vmatpush.msrb.mxu2 %v1426_v8  ;;  %826 = vmatpush.msrb.mxu3 %v1424_v5 }
 0x340   :  { %807 = vmatpush.msrb.mxu2 %v1432_v12  ;;  %827 = vmatpush.msrb.mxu3 %v1430_v11 }
 0x342   :  { %808 = vmatpush.msrb.mxu2 %v1438_v16  ;;  %828 = vmatpush.msrb.mxu3 %v1436_v15 }
 0x344   :  { %809 = vmatpush.msrb.mxu2 %v1444_v20  ;;  %829 = vmatpush.msrb.mxu3 %v1442_v17 }
 0x346   :  { %810 = vmatpush.msrb.mxu2 %v1450_v24  ;;  %830 = vmatpush.msrb.mxu3 %v1446_v21 }
 0x348   :  { %811 = vmatpush.msrb.mxu2 %v1456_v32  ;;  %831 = vmatpush.msrb.mxu3 %v1454_v31 }
 0x3bc   :  { %v469_v26 = vpop.f32.mrf.mxu3  ;;  %v449_v28 = vpop.f32.mrf.mxu2 }
 0x3bd   :  { %v474_v27 = vrot.slane %v469_v26, 6 }
 0x3bf   :  { %v475_v30 = vsel %vm205_vm1, %v449_v28, %v474_v27 }
 0x3c0   :  { %v477_v33 = vadd.f32 %v475_v30, %v212_v29 }
 0x3c2   :  { %v1109_v34 = vmul.f32 -1.442695, %v477_v33  ;;  %v498_v38 = vrot.slane %v477_v33, 2 }
 0x3c4   :  { %1159 = vpow2.f32 %v1109_v34 }
 0x3ca   :  { %v1160_v36 = vpop.eup %1159 }
 0x3cb   :  { %v481_v37 = vadd.f32 1.0, %v1160_v36  ;;  %v216_v36 = vsel %vm205_vm1, %v1584_v42, %v1586_v43 }
 0x3cd   :  { %1161 = vrcp.f32 %v481_v37  ;;  %v493_v47 = vand.u32 2147483648, %v481_v37  ;;  %v491_v49 = vand.u32 2147483647, %v481_v37  ;;  %vm487_vm14 = vweird.f32 %v481_v37 }
 0x3ce   :  { %1163 = vtanh.f32 %v498_v38 }
 0x3cf   :  { %v494_v52 = vor.u32 1.1754944e-38, %v493_v47  ;;  %vm492_vm2 = vcmp.eq.f32.partialorder %v491_v49, 8.507059e+37 }
 0x3d3   :  { %v1162_v41 = vpop.eup %1161 }
 0x3d4   :  { %v483_v40 = vmul.f32 %v1162_v41, %v481_v37  ;;  %vm488_vm13 = vweird.f32 %v1162_v41  ;;  %v1164_v55 = vpop.eup %1163 }
 0x3d5   :  { %vm489_vm15 = vmor %vm487_vm14, %vm488_vm13 }
 0x3d6   :  { %v484_v46 = vsub.f32 1.0, %v483_v40 }
 0x3d8   :  { %v485_v48 = vmul.f32 %v1162_v41, %v484_v46 }
 0x3da   :  { %v486_v50 = vadd.f32 %v1162_v41, %v485_v48 }
 0x3dc   :  { %v490_v54 = vsel %vm489_vm15, %v1162_v41, %v486_v50 }
 0x3dd   :  { %v495_v56 = vsel %vm492_vm2, %v494_v52, %v490_v54 }
 0x3de   :  { %510 = vrot.lane.b32.xlu1 %v495_v56, %s1354_s3  ;;  %v502_v57 = vmul.f32 %v1164_v55, %v495_v56  ;;  %v501_v58 = vmul.f32 %v495_v56, %v416_v14 }
 0x3e0   :  { %504 = vrot.lane.b32.xlu0 %v502_v57, %s1354_s3 }
 0x450   :  { %v511_v62 = vpop.permute.xlu1 %510 }
 0x451   :  { %v512_v63 = vrot.slane %v511_v62, 2 }
 0x452   :  { %v505_v59 = vpop.permute.xlu0 %504 }
 0x453   :  { %v507_v60 = vadd.f32 %v505_v59, %v501_v58 }
 0x455   :  { %1165 = vtanh.f32 %v507_v60 }
 0x45b   :  { %v1166_v61 = vpop.eup %1165 }
 0x45c   :  { %515 = vrot.lane.b32.xlu2 %v1166_v61, %s1354_s3 }
 0x4b6   :  { %v516_v51 = vpop.permute.xlu2 %515 }
 0x4b7   :  { %v518_v6 = vmul.f32 %v516_v51, %v512_v63 }
 0x4b9   :  { %v519_v7 = vadd.f32 %v518_v6, %v428_v3  ;;  %1110 = vmatmul.msk.f32.vlgmr.msra.gmra.mxu0 %vm148_vm0, %v518_v6  ;;  %1111 = vmatmul.msk.f32.vlgmr.msra.gmra.mxu1 %vm148_vm0, %v518_v6 }
 0x4ba   :  { %895 = vmatpush.msra.mxu0 %v1416_v1  ;;  %915 = vmatpush.msra.mxu1 %v1414_v0 }
 0x4bc   :  { %896 = vmatpush.msra.mxu0 %v1422_v4  ;;  %916 = vmatpush.msra.mxu1 %v1418_v2  ;;  %v215_v4 = vrot.slane %v1548_v53, 6 }
 0x4be   :  { %897 = vmatpush.msra.mxu0 %v1426_v8  ;;  %917 = vmatpush.msra.mxu1 %v1424_v5 }
 0x4c0   :  { %898 = vmatpush.msra.mxu0 %v1432_v12  ;;  %918 = vmatpush.msra.mxu1 %v1430_v11 }
 0x4c2   :  { %899 = vmatpush.msra.mxu0 %v1438_v16  ;;  %919 = vmatpush.msra.mxu1 %v1436_v15 }
 0x4c4   :  { %900 = vmatpush.msra.mxu0 %v1444_v20  ;;  %920 = vmatpush.msra.mxu1 %v1442_v17 }
 0x4c6   :  { %901 = vmatpush.msra.mxu0 %v1450_v24  ;;  %921 = vmatpush.msra.mxu1 %v1446_v21 }
 0x4c8   :  { %902 = vmatpush.msra.mxu0 %v1456_v32  ;;  %922 = vmatpush.msra.mxu1 %v1454_v31 }
 0x536   :  { %v560_v0 = vpop.f32.mrf.mxu1  ;;  %v540_v2 = vpop.f32.mrf.mxu0 }
 0x537   :  { %v565_v1 = vrot.slane %v560_v0, 6 }
 0x539   :  { %v566_v5 = vsel %vm205_vm1, %v540_v2, %v565_v1 }
 0x53a   :  { %v568_v8 = vadd.f32 %v566_v5, %v215_v4  ;;  %v218_v5 = vrot.slane %v1591_v44, 2 }
 0x53c   :  { %v1112_v11 = vmul.f32 -1.442695, %v568_v8  ;;  %v589_v17 = vrot.slane %v568_v8, 2 }
 0x53e   :  { %1167 = vpow2.f32 %v1112_v11 }
 0x544   :  { %v1168_v12 = vpop.eup %1167 }
 0x545   :  { %v572_v15 = vadd.f32 1.0, %v1168_v12 }
 0x547   :  { %1169 = vrcp.f32 %v572_v15  ;;  %v584_v24 = vand.u32 2147483648, %v572_v15  ;;  %v582_v32 = vand.u32 2147483647, %v572_v15  ;;  %vm578_vm4 = vweird.f32 %v572_v15 }
 0x548   :  { %1171 = vtanh.f32 %v589_v17 }
 0x549   :  { %v585_v53 = vor.u32 1.1754944e-38, %v584_v24  ;;  %vm583_vm6 = vcmp.eq.f32.partialorder %v582_v32, 8.507059e+37 }
 0x54d   :  { %v1170_v16 = vpop.eup %1169 }
 0x54e   :  { %v574_v20 = vmul.f32 %v1170_v16, %v572_v15  ;;  %vm579_vm3 = vweird.f32 %v1170_v16  ;;  %v1172_v10 = vpop.eup %1171 }
 0x54f   :  { %vm580_vm5 = vmor %vm578_vm4, %vm579_vm3 }
 0x550   :  { %v575_v21 = vsub.f32 1.0, %v574_v20 }
 0x552   :  { %v576_v31 = vmul.f32 %v1170_v16, %v575_v21 }
 0x554   :  { %v577_v35 = vadd.f32 %v1170_v16, %v576_v31 }
 0x556   :  { %v581_v9 = vsel %vm580_vm5, %v1170_v16, %v577_v35 }
 0x557   :  { %v586_v13 = vsel %vm583_vm6, %v585_v53, %v581_v9 }
 0x558   :  { %601 = vrot.lane.b32.xlu1 %v586_v13, %s1354_s3  ;;  %v593_v14 = vmul.f32 %v1172_v10, %v586_v13  ;;  %v592_v18 = vmul.f32 %v586_v13, %v507_v60 }
 0x55a   :  { %595 = vrot.lane.b32.xlu0 %v593_v14, %s1354_s3 }
 0x5ca   :  { %v602_v25 = vpop.permute.xlu1 %601 }
 0x5cb   :  { %v603_v26 = vrot.slane %v602_v25, 2 }
 0x5cc   :  { %v596_v19 = vpop.permute.xlu0 %595 }
 0x5cd   :  { %v598_v22 = vadd.f32 %v596_v19, %v592_v18 }
 0x5cf   :  { %1173 = vtanh.f32 %v598_v22 }
 0x5d5   :  { %v1174_v23 = vpop.eup %1173 }
 0x5d6   :  { %606 = vrot.lane.b32.xlu2 %v1174_v23, %s1354_s3 }
 0x630   :  { %v607_v27 = vpop.permute.xlu2 %606 }
 0x631   :  { %v609_v28 = vmul.f32 %v607_v27, %v603_v26 }
 0x633   :  { %v610_v29 = vadd.f32 %v609_v28, %v519_v7  ;;  %1113 = vmatmul.msk.f32.vlgmr.msra.gmra.mxu2 %vm148_vm0, %v609_v28  ;;  %1114 = vmatmul.msk.f32.vlgmr.msra.gmra.mxu3 %vm148_vm0, %v609_v28 }
 0x6b6   :  { %v651_v30 = vpop.f32.mrf.mxu3  ;;  %v631_v34 = vpop.f32.mrf.mxu2 }
 0x6b7   :  { %v656_v33 = vrot.slane %v651_v30, 6 }
 0x6b9   :  { %v657_v37 = vsel %vm205_vm1, %v631_v34, %v656_v33 }
 0x6ba   :  { %v659_v41 = vadd.f32 %v657_v37, %v216_v36  ;;  %v220_v36 = vrot.slane %v1596_v45, 4 }
 0x6bc   :  { %v1115_v38 = vmul.f32 -1.442695, %v659_v41  ;;  %v680_v48 = vrot.slane %v659_v41, 2 }
 0x6be   :  { %1175 = vpow2.f32 %v1115_v38 }
 0x6c4   :  { %v1176_v40 = vpop.eup %1175 }
 0x6c5   :  { %v663_v46 = vadd.f32 1.0, %v1176_v40 }
 0x6c7   :  { %1177 = vrcp.f32 %v663_v46  ;;  %v675_v52 = vand.u32 2147483648, %v663_v46  ;;  %v673_v55 = vand.u32 2147483647, %v663_v46  ;;  %vm669_vm8 = vweird.f32 %v663_v46 }
 0x6c8   :  { %1179 = vtanh.f32 %v680_v48 }
 0x6c9   :  { %v676_v42 = vor.u32 1.1754944e-38, %v675_v52  ;;  %vm674_vm10 = vcmp.eq.f32.partialorder %v673_v55, 8.507059e+37 }
 0x6cd   :  { %v1178_v47 = vpop.eup %1177 }
 0x6ce   :  { %v665_v49 = vmul.f32 %v1178_v47, %v663_v46  ;;  %vm670_vm7 = vweird.f32 %v1178_v47  ;;  %v1180_v57 = vpop.eup %1179 }
 0x6cf   :  { %vm671_vm9 = vmor %vm669_vm8, %vm670_vm7 }
 0x6d0   :  { %v666_v50 = vsub.f32 1.0, %v665_v49 }
 0x6d2   :  { %v667_v54 = vmul.f32 %v1178_v47, %v666_v50 }
 0x6d4   :  { %v668_v56 = vadd.f32 %v1178_v47, %v667_v54 }
 0x6d6   :  { %v672_v43 = vsel %vm671_vm9, %v1178_v47, %v668_v56  ;;  %vm976_vm9 = vcmask 517120  }
 0x6d7   :  { %v677_v58 = vsel %vm674_vm10, %v676_v42, %v672_v43 }
 0x6d8   :  { %692 = vrot.lane.b32.xlu1 %v677_v58, %s1354_s3  ;;  %v684_v59 = vmul.f32 %v1180_v57, %v677_v58  ;;  %v683_v60 = vmul.f32 %v677_v58, %v598_v22 }
 0x6da   :  { %686 = vrot.lane.b32.xlu0 %v684_v59, %s1354_s3 }
 0x74a   :  { %v693_v51 = vpop.permute.xlu1 %692 }
 0x74b   :  { %v694_v3 = vrot.slane %v693_v51, 2 }
 0x74c   :  { %v687_v61 = vpop.permute.xlu0 %686 }
 0x74d   :  { %v689_v62 = vadd.f32 %v687_v61, %v683_v60 }
 0x74f   :  { %1181 = vtanh.f32 %v689_v62 }
 0x755   :  { %v1182_v63 = vpop.eup %1181 }
 0x756   :  { %697 = vrot.lane.b32.xlu2 %v1182_v63, %s1354_s3 }
 0x7b0   :  { %v698_v6 = vpop.permute.xlu2 %697 }
 0x7b1   :  { %v700_v7 = vmul.f32 %v698_v6, %v694_v3 }
 0x7b3   :  { %v701_v0 = vadd.f32 %v700_v7, %v610_v29  ;;  %1116 = vmatmul.msk.f32.vlgmr.msrb.gmra.mxu0 %vm148_vm0, %v700_v7  ;;  %1117 = vmatmul.msk.f32.vlgmr.msrb.gmra.mxu1 %vm148_vm0, %v700_v7 }
 0x830   :  { %v742_v1 = vpop.f32.mrf.mxu1  ;;  %v722_v4 = vpop.f32.mrf.mxu0 }
 0x831   :  { %v747_v2 = vrot.slane %v742_v1, 6 }
 0x833   :  { %v748_v8 = vsel %vm205_vm1, %v722_v4, %v747_v2  ;;  %v222_v4 = vrot.slane %v1601_v39, 6 }
 0x834   :  { %v750_v11 = vadd.f32 %v748_v8, %v218_v5 }
 0x836   :  { %v1118_v12 = vmul.f32 -1.442695, %v750_v11  ;;  %v771_v20 = vrot.slane %v750_v11, 2 }
 0x838   :  { %1183 = vpow2.f32 %v1118_v12 }
 0x83e   :  { %v1184_v15 = vpop.eup %1183 }
 0x83f   :  { %v754_v16 = vadd.f32 1.0, %v1184_v15 }
 0x841   :  { %1185 = vrcp.f32 %v754_v16  ;;  %v766_v31 = vand.u32 2147483648, %v754_v16  ;;  %v764_v35 = vand.u32 2147483647, %v754_v16  ;;  %vm760_vm12 = vweird.f32 %v754_v16 }
 0x842   :  { %1187 = vtanh.f32 %v771_v20 }
 0x843   :  { %v767_v44 = vor.u32 1.1754944e-38, %v766_v31  ;;  %vm765_vm14 = vcmp.eq.f32.partialorder %v764_v35, 8.507059e+37 }
 0x847   :  { %v1186_v17 = vpop.eup %1185 }
 0x848   :  { %v756_v21 = vmul.f32 %v1186_v17, %v754_v16  ;;  %vm761_vm11 = vweird.f32 %v1186_v17  ;;  %v1188_v10 = vpop.eup %1187 }
 0x849   :  { %vm762_vm13 = vmor %vm760_vm12, %vm761_vm11 }
 0x84a   :  { %v757_v24 = vsub.f32 1.0, %v756_v21 }
 0x84c   :  { %v758_v32 = vmul.f32 %v1186_v17, %v757_v24 }
 0x84e   :  { %v759_v53 = vadd.f32 %v1186_v17, %v758_v32 }
 0x850   :  { %v763_v9 = vsel %vm762_vm13, %v1186_v17, %v759_v53 }
 0x851   :  { %v768_v13 = vsel %vm765_vm14, %v767_v44, %v763_v9 }
 0x852   :  { %783 = vrot.lane.b32.xlu1 %v768_v13, %s1354_s3  ;;  %v775_v14 = vmul.f32 %v1188_v10, %v768_v13  ;;  %v774_v18 = vmul.f32 %v768_v13, %v689_v62 }
 0x854   :  { %777 = vrot.lane.b32.xlu0 %v775_v14, %s1354_s3 }
 0x8c4   :  { %v784_v25 = vpop.permute.xlu1 %783 }
 0x8c5   :  { %v785_v26 = vrot.slane %v784_v25, 2 }
 0x8c6   :  { %v778_v19 = vpop.permute.xlu0 %777 }
 0x8c7   :  { %v780_v22 = vadd.f32 %v778_v19, %v774_v18 }
 0x8c9   :  { %1189 = vtanh.f32 %v780_v22 }
 0x8cf   :  { %v1190_v23 = vpop.eup %1189 }
 0x8d0   :  { %788 = vrot.lane.b32.xlu2 %v1190_v23, %s1354_s3 }
 0x92a   :  { %v789_v27 = vpop.permute.xlu2 %788 }
 0x92b   :  { %v791_v28 = vmul.f32 %v789_v27, %v785_v26 }
 0x92d   :  { %v792_v29 = vadd.f32 %v791_v28, %v701_v0  ;;  %1119 = vmatmul.msk.f32.vlgmr.msrb.gmra.mxu2 %vm148_vm0, %v791_v28  ;;  %1120 = vmatmul.msk.f32.vlgmr.msrb.gmra.mxu3 %vm148_vm0, %v791_v28 }
 0x9b0   :  { %v833_v30 = vpop.f32.mrf.mxu3  ;;  %v813_v34 = vpop.f32.mrf.mxu2 }
 0x9b1   :  { %v838_v33 = vrot.slane %v833_v30, 6  ;;  %v1355_v30 = vmov 64.0  }
 0x9b3   :  { %v839_v37 = vsel %vm205_vm1, %v813_v34, %v838_v33 }
 0x9b4   :  { %v841_v41 = vadd.f32 %v839_v37, %v220_v36 }
 0x9b6   :  { %v1121_v38 = vmul.f32 -1.442695, %v841_v41  ;;  %v862_v48 = vrot.slane %v841_v41, 2 }
 0x9b8   :  { %1191 = vpow2.f32 %v1121_v38 }
 0x9be   :  { %v1192_v40 = vpop.eup %1191 }
 0x9bf   :  { %v845_v46 = vadd.f32 1.0, %v1192_v40 }
 0x9c1   :  { %1193 = vrcp.f32 %v845_v46  ;;  %v857_v52 = vand.u32 2147483648, %v845_v46  ;;  %v855_v55 = vand.u32 2147483647, %v845_v46  ;;  %vm851_vm2 = vweird.f32 %v845_v46 }
 0x9c2   :  { %1195 = vtanh.f32 %v862_v48 }
 0x9c3   :  { %v858_v45 = vor.u32 1.1754944e-38, %v857_v52  ;;  %vm856_vm4 = vcmp.eq.f32.partialorder %v855_v55, 8.507059e+37  ;;  %v1022_v52 = vld [vmem:[#allocation8 + $0x30] sm:$0xff]  ;;  %v1020_v55 = vld [vmem:[#allocation8 + $0x20] sm:$0xff] }
 0x9c7   :  { %v1194_v47 = vpop.eup %1193 }
 0x9c8   :  { %v847_v49 = vmul.f32 %v1194_v47, %v845_v46  ;;  %vm852_vm15 = vweird.f32 %v1194_v47  ;;  %v1196_v43 = vpop.eup %1195 }
 0x9c9   :  { %vm853_vm3 = vmor %vm851_vm2, %vm852_vm15 }
 0x9ca   :  { %v848_v50 = vsub.f32 1.0, %v847_v49 }
 0x9cc   :  { %v849_v54 = vmul.f32 %v1194_v47, %v848_v50  ;;  %v1023_v50 = vld [vmem:[#allocation8 + $0x38] sm:$0xff] }
 0x9cd   :  { %1039 = vmatpush.msra.mxu2 %v1023_v50 }
 0x9ce   :  { %v850_v56 = vadd.f32 %v1194_v47, %v849_v54  ;;  %v1021_v54 = vld [vmem:[#allocation8 + $0x28] sm:$0xff] }
 0x9cf   :  { %1040 = vmatpush.msra.mxu2 %v1022_v52 }
 0x9d0   :  { %v854_v42 = vsel %vm853_vm3, %v1194_v47, %v850_v56  ;;  %v1019_v56 = vld [vmem:[#allocation8 + $0x18] sm:$0xff] }
 0x9d1   :  { %v859_v57 = vsel %vm856_vm4, %v858_v45, %v854_v42  ;;  %1041 = vmatpush.msra.mxu2 %v1021_v54  ;;  %v1018_v45 = vld [vmem:[#allocation8 + $0x10] sm:$0xff]  ;;  %v1017_v42 = vld [vmem:[#allocation8 + $0x8] sm:$0xff] }
 0x9d2   :  { %874 = vrot.lane.b32.xlu1 %v859_v57, %s1354_s3  ;;  %v866_v58 = vmul.f32 %v1196_v43, %v859_v57  ;;  %v865_v59 = vmul.f32 %v859_v57, %v780_v22  ;;  %v1016_v43 = vld [vmem:[#allocation8] sm:$0xff] }
 0x9d3   :  { %1042 = vmatpush.msra.mxu2 %v1020_v55 }
 0x9d4   :  { %868 = vrot.lane.b32.xlu0 %v866_v58, %s1354_s3 }
 0x9d5   :  { %1043 = vmatpush.msra.mxu2 %v1019_v56 }
 0x9d7   :  { %1044 = vmatpush.msra.mxu2 %v1018_v45 }
 0x9d9   :  { %1045 = vmatpush.msra.mxu2 %v1017_v42 }
 0x9db   :  { %1046 = vmatpush.msra.mxu2 %v1016_v43 }
 0xa44   :  { %v875_v63 = vpop.permute.xlu1 %874 }
 0xa45   :  { %v876_v51 = vrot.slane %v875_v63, 2 }
 0xa46   :  { %v869_v60 = vpop.permute.xlu0 %868 }
 0xa47   :  { %v871_v61 = vadd.f32 %v869_v60, %v865_v59 }
 0xa49   :  { %1197 = vtanh.f32 %v871_v61 }
 0xa4f   :  { %v1198_v62 = vpop.eup %1197 }
 0xa50   :  { %879 = vrot.lane.b32.xlu2 %v1198_v62, %s1354_s3 }
 0xaaa   :  { %v880_v3 = vpop.permute.xlu2 %879 }
 0xaab   :  { %v882_v6 = vmul.f32 %v880_v3, %v876_v51 }
 0xaad   :  { %1122 = vmatmul.msk.f32.vlgmr.msra.gmra.mxu0 %vm148_vm0, %v882_v6  ;;  %1123 = vmatmul.msk.f32.vlgmr.msra.gmra.mxu1 %vm148_vm0, %v882_v6  ;;  %v883_v7 = vadd.f32 %v882_v6, %v792_v29  ;;  %v1140_v6 = vld [vmem:[%s1707_s4] ss:$0 sm:$0xff]  ;;  %s1356_s4 = smov [#allocation10]  }
 0xb2a   :  { %v924_v0 = vpop.f32.mrf.mxu1  ;;  %v904_v2 = vpop.f32.mrf.mxu0 }
 0xb2b   :  { %v929_v1 = vrot.slane %v924_v0, 6 }
 0xb2d   :  { %v930_v5 = vsel %vm205_vm1, %v904_v2, %v929_v1  ;;  %v1141_v1 = vld [vmem:[%s1708_s5] ss:$0 sm:$0xff]  ;;  %s1085_s5 = sshll.u32 %s1356_s4, 4  ;;  %s1086_s5 = int_to_ptr.vmem [resolvable:$true] %s1085_s5 }
 0xb2e   :  { %v932_v8 = vadd.f32 %v930_v5, %v222_v4  ;;  %v1051_v5 = vlaneseq }
 0xb30   :  { %v1124_v11 = vmul.f32 -1.442695, %v932_v8  ;;  %v953_v17 = vrot.slane %v932_v8, 2  ;;  %v1052_v8 = vand.u32 127, %v1051_v5 }
 0xb32   :  { %1199 = vpow2.f32 %v1124_v11  ;;  %v1142_v11 = vld [vmem:[%s1710_s7] ss:$0 sm:$0xff]  ;;  %vm1053_vm14 = vcmp.lt.s32.totalorder %v1052_v8, 4 }
 0xb38   :  { %v1200_v12 = vpop.eup %1199 }
 0xb39   :  { %v936_v15 = vadd.f32 1.0, %v1200_v12 }
 0xb3b   :  { %1201 = vrcp.f32 %v936_v15  ;;  %v948_v24 = vand.u32 2147483648, %v936_v15  ;;  %v946_v32 = vand.u32 2147483647, %v936_v15  ;;  %vm942_vm6 = vweird.f32 %v936_v15 }
 0xb3c   :  { %1203 = vtanh.f32 %v953_v17 }
 0xb3d   :  { %v949_v39 = vor.u32 1.1754944e-38, %v948_v24  ;;  %vm947_vm8 = vcmp.eq.f32.partialorder %v946_v32, 8.507059e+37 }
 0xb41   :  { %v1202_v16 = vpop.eup %1201 }
 0xb42   :  { %v938_v20 = vmul.f32 %v1202_v16, %v936_v15  ;;  %vm943_vm5 = vweird.f32 %v1202_v16  ;;  %v1204_v44 = vpop.eup %1203 }
 0xb43   :  { %vm944_vm7 = vmor %vm942_vm6, %vm943_vm5 }
 0xb44   :  { %v939_v21 = vsub.f32 1.0, %v938_v20 }
 0xb46   :  { %v940_v31 = vmul.f32 %v1202_v16, %v939_v21 }
 0xb48   :  { %v941_v35 = vadd.f32 %v1202_v16, %v940_v31 }
 0xb4a   :  { %v945_v53 = vsel %vm944_vm7, %v1202_v16, %v941_v35 }
 0xb4b   :  { %v950_v9 = vsel %vm947_vm8, %v949_v39, %v945_v53 }
 0xb4c   :  { %965 = vrot.lane.b32.xlu1 %v950_v9, %s1354_s3  ;;  %v957_v10 = vmul.f32 %v1204_v44, %v950_v9  ;;  %v956_v13 = vmul.f32 %v950_v9, %v871_v61 }
 0xb4e   :  { %959 = vrot.lane.b32.xlu0 %v957_v10, %s1354_s3 }
 0xbbe   :  { %v966_v22 = vpop.permute.xlu1 %965 }
 0xbbf   :  { %v967_v23 = vrot.slane %v966_v22, 2 }
 0xbc0   :  { %v960_v14 = vpop.permute.xlu0 %959 }
 0xbc1   :  { %v962_v18 = vadd.f32 %v960_v14, %v956_v13 }
 0xbc3   :  { %1205 = vtanh.f32 %v962_v18 }
 0xbc4   :  { %1207 = vrcp.f32 %v1355_v30 }
 0xbc9   :  { %v1206_v19 = vpop.eup %1205 }
 0xbca   :  { %970 = vrot.lane.b32.xlu2 %v1206_v19, %s1354_s3  ;;  %v1208_v33 = vpop.eup %1207 }
 0xbcb   :  { %v981_v34 = vmul.f32 64.0, %v1208_v33  ;;  %vm985_vm10 = vweird.f32 %v1208_v33 }
 0xbcd   :  { %v982_v36 = vsub.f32 1.0, %v981_v34 }
 0xbcf   :  { %v983_v37 = vmul.f32 %v1208_v33, %v982_v36 }
 0xbd1   :  { %v984_v41 = vadd.f32 %v1208_v33, %v983_v37 }
 0xbd3   :  { %v986_v38 = vsel %vm985_vm10, %v1208_v33, %v984_v41 }
 0xc24   :  { %v971_v25 = vpop.permute.xlu2 %970 }
 0xc25   :  { %v973_v26 = vmul.f32 %v971_v25, %v967_v23 }
 0xc27   :  { %v974_v27 = vadd.f32 %v973_v26, %v883_v7 }
 0xc29   :  { %v975_v28 = vmul.f32 0.125, %v974_v27 }
 0xc2b   :  { %v977_v29 = vsel %vm976_vm9, %v975_v28, 0.0 }
 0xc2c   :  { %978 = vadd.xlane.f32.xlu0 %v977_v29 }
 0xc9f   :  { %v979_v40 = vpop.xlane.xlu0 %978 }
 0xca0   :  { %v987_v46 = vmul.f32 %v986_v38, %v979_v40 }
 0xca2   :  { %v988_v47 = vsub.f32 %v975_v28, %v987_v46 }
 0xca4   :  { %v989_v48 = vmul.f32 %v988_v47, %v988_v47 }
 0xca6   :  { %v990_v49 = vsel %vm976_vm9, %v989_v48, 0.0 }
 0xca7   :  { %991 = vadd.xlane.f32.xlu1 %v990_v49 }
 0xd1a   :  { %v992_v57 = vpop.xlane.xlu1 %991 }
 0xd1b   :  { %v993_v58 = vmul.f32 %v992_v57, %v986_v38 }
 0xd1d   :  { %v994_v59 = vadd.f32 1e-05, %v993_v58 }
 0xd1f   :  { %1209 = vrsqrt.f32 %v994_v59  ;;  %vm1001_vm12 = vweird.f32 %v994_v59 }
 0xd25   :  { %v1210_v60 = vpop.eup %1209 }
 0xd26   :  { %v996_v61 = vmul.f32 %v1210_v60, %v994_v59  ;;  %vm1002_vm11 = vweird.f32 %v1210_v60 }
 0xd27   :  { %vm1003_vm13 = vmor %vm1001_vm12, %vm1002_vm11 }
 0xd28   :  { %v997_v62 = vmul.f32 %v1210_v60, %v996_v61 }
 0xd2a   :  { %v998_v63 = vmul.f32 0.5, %v997_v62 }
 0xd2c   :  { %v999_v51 = vsub.f32 1.5, %v998_v63 }
 0xd2e   :  { %v1000_v3 = vmul.f32 %v1210_v60, %v999_v51 }
 0xd30   :  { %v1004_v7 = vsel %vm1003_vm13, %v1210_v60, %v1000_v3 }
 0xd31   :  { %v1005_v0 = vmul.f32 %v1004_v7, %v988_v47 }
 0xd33   :  { %v1010_v2 = vmul.f32 %v1140_v6, %v1005_v0 }
 0xd35   :  { %v1015_v4 = vadd.f32 %v1141_v1, %v1010_v2 }
 0xd37   :  { %1125 = vmatmul.msk.f32.vlgmr.msra.gmra.mxu2 %vm148_vm0, %v1015_v4 }
 0xdba   :  { %v1048_v12 = vpop.f32.mrf.mxu2 }
 0xdbb   :  { %v1049_v15 = vadd.f32 %v1142_v11, %v1048_v12 }
 0xdbd   :  { %v1054_v16 = vsel %vm1053_vm14, %v1049_v15, -1e+30 }
 0xdbe   :  { %v1055_v17 = vsel %vm205_vm1, %v1054_v16, -inf }
 0xdbf   :  { %1056 = vmax.xlane.f32.xlu2 %v1055_v17 }
 0xe32   :  { %v1057_v20 = vpop.xlane.xlu2 %1056 }
 0xe33   :  { %v1058_v21 = vsub.f32 %v1054_v16, %v1057_v20 }
 0xe35   :  { %v1059_v24 = vmul.f32 1.442695, %v1058_v21 }
 0xe37   :  { %1211 = vpow2.f32 %v1059_v24 }
 0xe3d   :  { %v1212_v31 = vpop.eup %1211 }
 0xe3e   :  { %v1061_v32 = vsel %vm205_vm1, %v1212_v31, 0.0 }
 0xe3f   :  { %1062 = vadd.xlane.f32.xlu2 %v1061_v32 }
 0xeb2   :  { %v1063_v35 = vpop.xlane.xlu2 %1062 }
 0xeb3   :  { %1213 = vrcp.f32 %v1063_v35  ;;  %v1075_v9 = vand.u32 2147483648, %v1063_v35  ;;  %v1073_v13 = vand.u32 2147483647, %v1063_v35  ;;  %vm1069_vm15 = vweird.f32 %v1063_v35 }
 0xeb5   :  { %v1076_v18 = vor.u32 1.1754944e-38, %v1075_v9  ;;  %vm1074_vm1 = vcmp.eq.f32.partialorder %v1073_v13, 8.507059e+37 }
 0xeb9   :  { %v1214_v39 = vpop.eup %1213 }
 0xeba   :  { %v1065_v53 = vmul.f32 %v1214_v39, %v1063_v35  ;;  %vm1070_vm0 = vweird.f32 %v1214_v39 }
 0xebb   :  { %vm1071_vm2 = vmor %vm1069_vm15, %vm1070_vm0 }
 0xebc   :  { %v1066_v44 = vsub.f32 1.0, %v1065_v53 }
 0xebe   :  { %v1067_v10 = vmul.f32 %v1214_v39, %v1066_v44 }
 0xec0   :  { %v1068_v14 = vadd.f32 %v1214_v39, %v1067_v10 }
 0xec2   :  { %v1072_v19 = vsel %vm1071_vm2, %v1214_v39, %v1068_v14 }
 0xec3   :  { %v1077_v22 = vsel %vm1074_vm1, %v1076_v18, %v1072_v19 }
 0xec4   :  { %v1078_v23 = vmul.f32 %v1212_v31, %v1077_v22 }
 0xec6   :  { %1079 = vst [vmem:[#allocation10] sm:$0x3] %v1078_v23 }
 0xec7   :  { %1090 = dma.vmem_to_hbm [thread:$0]  %s1086_s5, 32, %s1088_s14, [#allocation4]  }
 0xec8   :  { %1341 = dma.done.wait [#allocation4], 32  }
 0xec9   :  { %1342 = vsyncadd [#allocation4], 4294967264 }
 0xeca   :  { %1095 = vsyncpa [#allocation3], 1 }
 0xecb   :  { %1096 = vsyncpa [#allocation6], 1 }
 0xecc   :  { %1097 = vsyncpa [#allocation9], 1 }
 0xecd   :  { %1098 = vsyncpa [#allocation4], 1 }

</bundles_post_ra>
